<compile_context>
chip_gen: v6e
topology: v6e:2x2x1
jax: 0.10.0
libtpu: 0.0.40
codegen_flags: <defaults>
</compile_context>

<pallas_src>
import jax
import jax.numpy as jnp
from jax.experimental import pallas as pl
from jax.experimental.pallas import tpu as pltpu

SEQ = 4          # rows per instance fed through the attention pattern
HALF = 8         # x1 / x2 feature width -> concat width 16 (= Linear in_features)
D_IN = 2 * HALF  # 16
D_PROJ = 16      # projection width (see TODO above)

CH = 128         # lanes (batch instances) per inner chunk = vreg lane width
BB_MAX = 1024    # max lanes per grid step (8 chunks) -> ~0.65 MiB moved per step


def _attn_kernel(x1_ref, x2_ref, w_ref, b_ref, o_ref):
    """Lane-parallel sfdp attention over `bb` independent instances.

    x1_ref : (SEQ, HALF, bb)     f32   first half of q (== v)
    x2_ref : (SEQ, HALF, bb)     f32   second half of q (== v)
    w_ref  : (D_IN, D_PROJ, CH)  f32   Linear weight, transposed + lane-broadcast
    b_ref  : (D_PROJ, CH)        f32   Linear bias, lane-broadcast
    o_ref  : (SEQ, D_IN, bb)     f32
    """
    bb = x1_ref.shape[-1]
    nch = bb // CH

    @pl.loop(0, nch)
    def _chunk(c):
        off = pl.multiple_of(c * CH, CH)
        lanes = pl.ds(off, CH)

        # q = cat([x1, x2], -1), kept as two exactly-(8,128)-tiled halves; v == q.
        x1c = x1_ref[:, :, lanes]                        # (SEQ, HALF, CH)
        x2c = x2_ref[:, :, lanes]                        # (SEQ, HALF, CH)

        # k = q @ W^T + b : accumulate over input feature d (live temp ~8 vregs;
        # no 4-D broadcast temporary, no XLU feature reduce).
        k_lo = jnp.broadcast_to(b_ref[:HALF][None], (SEQ, HALF, CH))
        k_hi = jnp.broadcast_to(b_ref[HALF:][None], (SEQ, HALF, CH))
        for d in range(D_IN):
            if d < HALF:
                qd = x1c[:, d:d + 1, :]                  # (SEQ, 1, CH)
            else:
                qd = x2c[:, d - HALF:d - HALF + 1, :]
            k_lo = k_lo + qd * w_ref[d, :HALF][None]     # (SEQ, HALF, CH)
            k_hi = k_hi + qd * w_ref[d, HALF:][None]
        # (k_lo, k_hi) are the two 8-wide halves of k : (SEQ, D_PROJ, CH)

        # s[i, j] = sum_p q[i, p] * k[j, p]   (inv_scale_factor == 1 -> no divide)
        s = []
        for j in range(SEQ):
            sj = (jnp.sum(x1c * k_lo[j][None], axis=1, keepdims=True)
                  + jnp.sum(x2c * k_hi[j][None], axis=1, keepdims=True))
            s.append(sj)                                 # (SEQ, 1, CH)

        # numerically stable softmax over the key index j (dropout_p == 0 -> no-op)
        m = s[0]
        for j in range(1, SEQ):
            m = jnp.maximum(m, s[j])
        e = [jnp.exp(sj - m) for sj in s]
        denom = e[0]
        for j in range(1, SEQ):
            denom = denom + e[j]
        r = pl.reciprocal(denom, approx=False)           # EUP, off the VALU path

        # output = softmax(qk) @ v with v == q : accumulate over j
        p0 = e[0] * r
        o_lo = p0 * x1c[0][None]                         # (SEQ, HALF, CH)
        o_hi = p0 * x2c[0][None]
        for j in range(1, SEQ):
            pj = e[j] * r
            o_lo = o_lo + pj * x1c[j][None]
            o_hi = o_hi + pj * x2c[j][None]

        o_ref[:, 0:HALF, lanes] = o_lo
        o_ref[:, HALF:D_IN, lanes] = o_hi


def _round_up(x, m):
    return ((x + m - 1) // m) * m


def sdpa_model(x1, x2, weight, bias):
    """Batched forward of the (fixed-up) module.

    x1, x2 : (B, SEQ, HALF) f32
    weight : (D_PROJ, D_IN) f32   (PyTorch Linear layout: out_features x in_features)
    bias   : (D_PROJ,)      f32
    returns: (B, SEQ, D_IN) f32
    """
    x1 = x1.astype(jnp.float32)
    x2 = x2.astype(jnp.float32)
    weight = weight.astype(jnp.float32)
    bias = bias.astype(jnp.float32)

    B = x1.shape[0]
    bb = min(BB_MAX, _round_up(B, CH))       # lanes per grid step (multiple of 128)
    n_pad = _round_up(B, bb)
    if n_pad != B:                           # arbitrary batch: pad, don't assert
        pad = ((0, n_pad - B), (0, 0), (0, 0))
        x1 = jnp.pad(x1, pad)
        x2 = jnp.pad(x2, pad)

    # Layout plumbing: batch on the lane (last) axis so every block is (8,128)-aligned
    # and all kernel loads/stores are lane-dense.
    # TODO(synk): if the producer/consumer adopt a (SEQ, feat, B) activation layout,
    # these transposes (and the output one) disappear entirely.
    x1_t = jnp.transpose(x1, (1, 2, 0))      # (SEQ, HALF, n_pad)
    x2_t = jnp.transpose(x2, (1, 2, 0))      # (SEQ, HALF, n_pad)

    # Weight^T / bias pre-broadcast across one 128-lane chunk: w_ref[d] is directly
    # usable inside the kernel with no per-use lane broadcast (~128 KiB/step extra
    # HBM read is negligible next to the activation traffic).
    w_t = jnp.broadcast_to(weight.T[:, :, None], (D_IN, D_PROJ, CH))
    b_t = jnp.broadcast_to(bias[:, None], (D_PROJ, CH))

    out_t = pl.pallas_call(
        _attn_kernel,
        out_shape=jax.ShapeDtypeStruct((SEQ, D_IN, n_pad), jnp.float32),
        grid=(n_pad // bb,),
        in_specs=[
            pl.BlockSpec((SEQ, HALF, bb), lambda i: (0, 0, i)),
            pl.BlockSpec((SEQ, HALF, bb), lambda i: (0, 0, i)),
            pl.BlockSpec((D_IN, D_PROJ, CH), lambda i: (0, 0, 0)),
            pl.BlockSpec((D_PROJ, CH), lambda i: (0, 0)),
        ],
        out_specs=pl.BlockSpec((SEQ, D_IN, bb), lambda i: (0, 0, i)),
        compiler_params=pltpu.CompilerParams(
            dimension_semantics=("parallel",)),   # megacore shards the batch axis
    )(x1_t, x2_t, w_t, b_t)

    out = jnp.transpose(out_t, (2, 0, 1))    # (n_pad, SEQ, D_IN)
    return out[:B]


def _reference(x1, x2, weight, bias):
    q = jnp.concatenate([x1, x2], axis=-1)                  # (B, SEQ, D_IN)
    k = jnp.einsum('bsd,pd->bsp', q, weight) + bias         # Linear: q @ W^T + b
    s = jnp.einsum('bip,bjp->bij', q, k)                    # q @ k^T (scale = 1)
    p = jax.nn.softmax(s, axis=-1)                          # dropout_p = 0 -> no-op
    return jnp.einsum('bij,bjd->bid', p, q)                 # v == q


if __name__ == "__main__":
    key = jax.random.PRNGKey(0)
    k1, k2, kw, kb = jax.random.split(key, 4)

    # Non-multiple-of-block batch: exercises the padding path and gives 2 grid steps.
    B = 1900
    x1 = jax.random.normal(k1, (B, SEQ, HALF), dtype=jnp.float32)
    x2 = jax.random.normal(k2, (B, SEQ, HALF), dtype=jnp.float32)

    # Deterministic "Linear" parameters (PyTorch-style uniform fan-in init).
    bound = 1.0 / jnp.sqrt(jnp.float32(D_IN))
    weight = jax.random.uniform(kw, (D_PROJ, D_IN), jnp.float32, -bound, bound)
    bias = jax.random.uniform(kb, (D_PROJ,), jnp.float32, -bound, bound)

    out = jax.block_until_ready(jax.jit(sdpa_model)(x1, x2, weight, bias))

    ref = _reference(x1, x2, weight, bias)
    assert out.shape == (B, SEQ, D_IN)
    assert jnp.allclose(out, ref, atol=1e-4, rtol=1e-4), "mismatch vs reference"

    print("KERNEL_OK")
</pallas_src>

<mosaic_0001>
module attributes {stable_mosaic.version = 11 : i64} {
  func.func @_attn_kernel(%arg0: i32, %arg1: memref<4x8x1024xf32, #tpu.memory_space<vmem>>, %arg2: memref<4x8x1024xf32, #tpu.memory_space<vmem>>, %arg3: memref<16x16x128xf32, #tpu.memory_space<vmem>>, %arg4: memref<16x128xf32, #tpu.memory_space<vmem>>, %arg5: memref<4x16x1024xf32, #tpu.memory_space<vmem>>) attributes {dimension_semantics = [#tpu.dimension_semantics<parallel>], iteration_bounds = array<i64: 2>, scalar_prefetch = 0 : i64, scratch_operands = 0 : i64, tpu.core_type = #tpu.core_type<tc>, window_params = [{transform_indices = @transform_0, window_bounds = array<i64: 4, 8, 1024>}, {transform_indices = @transform_1, window_bounds = array<i64: 4, 8, 1024>}, {pipeline_mode = #tpu.pipeline_mode<synchronous>, transform_indices = @transform_2, window_bounds = array<i64: 16, 16, 128>}, {pipeline_mode = #tpu.pipeline_mode<synchronous>, transform_indices = @transform_3, window_bounds = array<i64: 16, 128>}, {transform_indices = @transform_4, window_bounds = array<i64: 4, 16, 1024>}]} {
    %c0_i32 = arith.constant 0 : i32
    %c8_i32 = arith.constant 8 : i32
    %0 = arith.addi %c0_i32, %c8_i32 : i32
    %c1_i32 = arith.constant 1 : i32
    scf.for %arg6 = %c0_i32 to %0 step %c1_i32  : i32 {
      %c1_i32_1 = arith.constant 1 : i32
      %1 = arith.muli %arg6, %c1_i32_1 : i32
      %c0_i32_2 = arith.constant 0 : i32
      %2 = arith.addi %c0_i32_2, %1 : i32
      %c128_i32 = arith.constant 128 : i32
      %3 = arith.muli %2, %c128_i32 : i32
      %4 = tpu.assume_multiple %3, 128 : i32
      %c0 = arith.constant 0 : index
      %c0_3 = arith.constant 0 : index
      %5 = arith.index_cast %4 : i32 to index
      %6 = vector.load %arg1[%c0, %c0_3, %5] : memref<4x8x1024xf32, #tpu.memory_space<vmem>>, vector<4x8x128xf32>
      %c0_4 = arith.constant 0 : index
      %c0_5 = arith.constant 0 : index
      %7 = arith.index_cast %4 : i32 to index
      %8 = vector.load %arg2[%c0_4, %c0_5, %7] : memref<4x8x1024xf32, #tpu.memory_space<vmem>>, vector<4x8x128xf32>
      %c0_6 = arith.constant 0 : index
      %c0_7 = arith.constant 0 : index
      %9 = vector.load %arg4[%c0_6, %c0_7] : memref<16x128xf32, #tpu.memory_space<vmem>>, vector<8x128xf32>
      %10 = vector.shape_cast %9 : vector<8x128xf32> to vector<1x8x128xf32>
      %11 = vector.shape_cast %10 : vector<1x8x128xf32> to vector<1x8x128xf32>
      %12 = vector.broadcast %11 : vector<1x8x128xf32> to vector<4x8x128xf32>
      %c8 = arith.constant 8 : index
      %c0_8 = arith.constant 0 : index
      %13 = vector.load %arg4[%c8, %c0_8] : memref<16x128xf32, #tpu.memory_space<vmem>>, vector<8x128xf32>
      %14 = vector.shape_cast %13 : vector<8x128xf32> to vector<1x8x128xf32>
      %15 = vector.shape_cast %14 : vector<1x8x128xf32> to vector<1x8x128xf32>
      %16 = vector.broadcast %15 : vector<1x8x128xf32> to vector<4x8x128xf32>
      %17 = vector.extract_strided_slice %6 {offsets = [0, 0, 0], sizes = [4, 1, 128], strides = [1, 1, 1]} : vector<4x8x128xf32> to vector<4x1x128xf32>
      %c0_9 = arith.constant 0 : index
      %c0_10 = arith.constant 0 : index
      %c0_11 = arith.constant 0 : index
      %18 = vector.load %arg3[%c0_9, %c0_10, %c0_11] : memref<16x16x128xf32, #tpu.memory_space<vmem>>, vector<1x8x128xf32>
      %19 = vector.shape_cast %18 : vector<1x8x128xf32> to vector<8x128xf32>
      %20 = vector.shape_cast %19 : vector<8x128xf32> to vector<1x8x128xf32>
      %21 = vector.broadcast %17 : vector<4x1x128xf32> to vector<4x8x128xf32>
      %22 = vector.broadcast %20 : vector<1x8x128xf32> to vector<4x8x128xf32>
      %23 = arith.mulf %21, %22 : vector<4x8x128xf32>
      %24 = arith.addf %12, %23 : vector<4x8x128xf32>
      %c0_12 = arith.constant 0 : index
      %c8_13 = arith.constant 8 : index
      %c0_14 = arith.constant 0 : index
      %25 = vector.load %arg3[%c0_12, %c8_13, %c0_14] : memref<16x16x128xf32, #tpu.memory_space<vmem>>, vector<1x8x128xf32>
      %26 = vector.shape_cast %25 : vector<1x8x128xf32> to vector<8x128xf32>
      %27 = vector.shape_cast %26 : vector<8x128xf32> to vector<1x8x128xf32>
      %28 = vector.broadcast %17 : vector<4x1x128xf32> to vector<4x8x128xf32>
      %29 = vector.broadcast %27 : vector<1x8x128xf32> to vector<4x8x128xf32>
      %30 = arith.mulf %28, %29 : vector<4x8x128xf32>
      %31 = arith.addf %16, %30 : vector<4x8x128xf32>
      %32 = vector.extract_strided_slice %6 {offsets = [0, 1, 0], sizes = [4, 1, 128], strides = [1, 1, 1]} : vector<4x8x128xf32> to vector<4x1x128xf32>
      %c1 = arith.constant 1 : index
      %c0_15 = arith.constant 0 : index
      %c0_16 = arith.constant 0 : index
      %33 = vector.load %arg3[%c1, %c0_15, %c0_16] : memref<16x16x128xf32, #tpu.memory_space<vmem>>, vector<1x8x128xf32>
      %34 = vector.shape_cast %33 : vector<1x8x128xf32> to vector<8x128xf32>
      %35 = vector.shape_cast %34 : vector<8x128xf32> to vector<1x8x128xf32>
      %36 = vector.broadcast %32 : vector<4x1x128xf32> to vector<4x8x128xf32>
      %37 = vector.broadcast %35 : vector<1x8x128xf32> to vector<4x8x128xf32>
      %38 = arith.mulf %36, %37 : vector<4x8x128xf32>
      %39 = arith.addf %24, %38 : vector<4x8x128xf32>
      %c1_17 = arith.constant 1 : index
      %c8_18 = arith.constant 8 : index
      %c0_19 = arith.constant 0 : index
      %40 = vector.load %arg3[%c1_17, %c8_18, %c0_19] : memref<16x16x128xf32, #tpu.memory_space<vmem>>, vector<1x8x128xf32>
      %41 = vector.shape_cast %40 : vector<1x8x128xf32> to vector<8x128xf32>
      %42 = vector.shape_cast %41 : vector<8x128xf32> to vector<1x8x128xf32>
      %43 = vector.broadcast %32 : vector<4x1x128xf32> to vector<4x8x128xf32>
      %44 = vector.broadcast %42 : vector<1x8x128xf32> to vector<4x8x128xf32>
      %45 = arith.mulf %43, %44 : vector<4x8x128xf32>
      %46 = arith.addf %31, %45 : vector<4x8x128xf32>
      %47 = vector.extract_strided_slice %6 {offsets = [0, 2, 0], sizes = [4, 1, 128], strides = [1, 1, 1]} : vector<4x8x128xf32> to vector<4x1x128xf32>
      %c2 = arith.constant 2 : index
      %c0_20 = arith.constant 0 : index
      %c0_21 = arith.constant 0 : index
      %48 = vector.load %arg3[%c2, %c0_20, %c0_21] : memref<16x16x128xf32, #tpu.memory_space<vmem>>, vector<1x8x128xf32>
      %49 = vector.shape_cast %48 : vector<1x8x128xf32> to vector<8x128xf32>
      %50 = vector.shape_cast %49 : vector<8x128xf32> to vector<1x8x128xf32>
      %51 = vector.broadcast %47 : vector<4x1x128xf32> to vector<4x8x128xf32>
      %52 = vector.broadcast %50 : vector<1x8x128xf32> to vector<4x8x128xf32>
      %53 = arith.mulf %51, %52 : vector<4x8x128xf32>
      %54 = arith.addf %39, %53 : vector<4x8x128xf32>
      %c2_22 = arith.constant 2 : index
      %c8_23 = arith.constant 8 : index
      %c0_24 = arith.constant 0 : index
      %55 = vector.load %arg3[%c2_22, %c8_23, %c0_24] : memref<16x16x128xf32, #tpu.memory_space<vmem>>, vector<1x8x128xf32>
      %56 = vector.shape_cast %55 : vector<1x8x128xf32> to vector<8x128xf32>
      %57 = vector.shape_cast %56 : vector<8x128xf32> to vector<1x8x128xf32>
      %58 = vector.broadcast %47 : vector<4x1x128xf32> to vector<4x8x128xf32>
      %59 = vector.broadcast %57 : vector<1x8x128xf32> to vector<4x8x128xf32>
      %60 = arith.mulf %58, %59 : vector<4x8x128xf32>
      %61 = arith.addf %46, %60 : vector<4x8x128xf32>
      %62 = vector.extract_strided_slice %6 {offsets = [0, 3, 0], sizes = [4, 1, 128], strides = [1, 1, 1]} : vector<4x8x128xf32> to vector<4x1x128xf32>
      %c3 = arith.constant 3 : index
      %c0_25 = arith.constant 0 : index
      %c0_26 = arith.constant 0 : index
      %63 = vector.load %arg3[%c3, %c0_25, %c0_26] : memref<16x16x128xf32, #tpu.memory_space<vmem>>, vector<1x8x128xf32>
      %64 = vector.shape_cast %63 : vector<1x8x128xf32> to vector<8x128xf32>
      %65 = vector.shape_cast %64 : vector<8x128xf32> to vector<1x8x128xf32>
      %66 = vector.broadcast %62 : vector<4x1x128xf32> to vector<4x8x128xf32>
      %67 = vector.broadcast %65 : vector<1x8x128xf32> to vector<4x8x128xf32>
      %68 = arith.mulf %66, %67 : vector<4x8x128xf32>
      %69 = arith.addf %54, %68 : vector<4x8x128xf32>
      %c3_27 = arith.constant 3 : index
      %c8_28 = arith.constant 8 : index
      %c0_29 = arith.constant 0 : index
      %70 = vector.load %arg3[%c3_27, %c8_28, %c0_29] : memref<16x16x128xf32, #tpu.memory_space<vmem>>, vector<1x8x128xf32>
      %71 = vector.shape_cast %70 : vector<1x8x128xf32> to vector<8x128xf32>
      %72 = vector.shape_cast %71 : vector<8x128xf32> to vector<1x8x128xf32>
      %73 = vector.broadcast %62 : vector<4x1x128xf32> to vector<4x8x128xf32>
      %74 = vector.broadcast %72 : vector<1x8x128xf32> to vector<4x8x128xf32>
      %75 = arith.mulf %73, %74 : vector<4x8x128xf32>
      %76 = arith.addf %61, %75 : vector<4x8x128xf32>
      %77 = vector.extract_strided_slice %6 {offsets = [0, 4, 0], sizes = [4, 1, 128], strides = [1, 1, 1]} : vector<4x8x128xf32> to vector<4x1x128xf32>
      %c4 = arith.constant 4 : index
      %c0_30 = arith.constant 0 : index
      %c0_31 = arith.constant 0 : index
      %78 = vector.load %arg3[%c4, %c0_30, %c0_31] : memref<16x16x128xf32, #tpu.memory_space<vmem>>, vector<1x8x128xf32>
      %79 = vector.shape_cast %78 : vector<1x8x128xf32> to vector<8x128xf32>
      %80 = vector.shape_cast %79 : vector<8x128xf32> to vector<1x8x128xf32>
      %81 = vector.broadcast %77 : vector<4x1x128xf32> to vector<4x8x128xf32>
      %82 = vector.broadcast %80 : vector<1x8x128xf32> to vector<4x8x128xf32>
      %83 = arith.mulf %81, %82 : vector<4x8x128xf32>
      %84 = arith.addf %69, %83 : vector<4x8x128xf32>
      %c4_32 = arith.constant 4 : index
      %c8_33 = arith.constant 8 : index
      %c0_34 = arith.constant 0 : index
      %85 = vector.load %arg3[%c4_32, %c8_33, %c0_34] : memref<16x16x128xf32, #tpu.memory_space<vmem>>, vector<1x8x128xf32>
      %86 = vector.shape_cast %85 : vector<1x8x128xf32> to vector<8x128xf32>
      %87 = vector.shape_cast %86 : vector<8x128xf32> to vector<1x8x128xf32>
      %88 = vector.broadcast %77 : vector<4x1x128xf32> to vector<4x8x128xf32>
      %89 = vector.broadcast %87 : vector<1x8x128xf32> to vector<4x8x128xf32>
      %90 = arith.mulf %88, %89 : vector<4x8x128xf32>
      %91 = arith.addf %76, %90 : vector<4x8x128xf32>
      %92 = vector.extract_strided_slice %6 {offsets = [0, 5, 0], sizes = [4, 1, 128], strides = [1, 1, 1]} : vector<4x8x128xf32> to vector<4x1x128xf32>
      %c5 = arith.constant 5 : index
      %c0_35 = arith.constant 0 : index
      %c0_36 = arith.constant 0 : index
      %93 = vector.load %arg3[%c5, %c0_35, %c0_36] : memref<16x16x128xf32, #tpu.memory_space<vmem>>, vector<1x8x128xf32>
      %94 = vector.shape_cast %93 : vector<1x8x128xf32> to vector<8x128xf32>
      %95 = vector.shape_cast %94 : vector<8x128xf32> to vector<1x8x128xf32>
      %96 = vector.broadcast %92 : vector<4x1x128xf32> to vector<4x8x128xf32>
      %97 = vector.broadcast %95 : vector<1x8x128xf32> to vector<4x8x128xf32>
      %98 = arith.mulf %96, %97 : vector<4x8x128xf32>
      %99 = arith.addf %84, %98 : vector<4x8x128xf32>
      %c5_37 = arith.constant 5 : index
      %c8_38 = arith.constant 8 : index
      %c0_39 = arith.constant 0 : index
      %100 = vector.load %arg3[%c5_37, %c8_38, %c0_39] : memref<16x16x128xf32, #tpu.memory_space<vmem>>, vector<1x8x128xf32>
      %101 = vector.shape_cast %100 : vector<1x8x128xf32> to vector<8x128xf32>
      %102 = vector.shape_cast %101 : vector<8x128xf32> to vector<1x8x128xf32>
      %103 = vector.broadcast %92 : vector<4x1x128xf32> to vector<4x8x128xf32>
      %104 = vector.broadcast %102 : vector<1x8x128xf32> to vector<4x8x128xf32>
      %105 = arith.mulf %103, %104 : vector<4x8x128xf32>
      %106 = arith.addf %91, %105 : vector<4x8x128xf32>
      %107 = vector.extract_strided_slice %6 {offsets = [0, 6, 0], sizes = [4, 1, 128], strides = [1, 1, 1]} : vector<4x8x128xf32> to vector<4x1x128xf32>
      %c6 = arith.constant 6 : index
      %c0_40 = arith.constant 0 : index
      %c0_41 = arith.constant 0 : index
      %108 = vector.load %arg3[%c6, %c0_40, %c0_41] : memref<16x16x128xf32, #tpu.memory_space<vmem>>, vector<1x8x128xf32>
      %109 = vector.shape_cast %108 : vector<1x8x128xf32> to vector<8x128xf32>
      %110 = vector.shape_cast %109 : vector<8x128xf32> to vector<1x8x128xf32>
      %111 = vector.broadcast %107 : vector<4x1x128xf32> to vector<4x8x128xf32>
      %112 = vector.broadcast %110 : vector<1x8x128xf32> to vector<4x8x128xf32>
      %113 = arith.mulf %111, %112 : vector<4x8x128xf32>
      %114 = arith.addf %99, %113 : vector<4x8x128xf32>
      %c6_42 = arith.constant 6 : index
      %c8_43 = arith.constant 8 : index
      %c0_44 = arith.constant 0 : index
      %115 = vector.load %arg3[%c6_42, %c8_43, %c0_44] : memref<16x16x128xf32, #tpu.memory_space<vmem>>, vector<1x8x128xf32>
      %116 = vector.shape_cast %115 : vector<1x8x128xf32> to vector<8x128xf32>
      %117 = vector.shape_cast %116 : vector<8x128xf32> to vector<1x8x128xf32>
      %118 = vector.broadcast %107 : vector<4x1x128xf32> to vector<4x8x128xf32>
      %119 = vector.broadcast %117 : vector<1x8x128xf32> to vector<4x8x128xf32>
      %120 = arith.mulf %118, %119 : vector<4x8x128xf32>
      %121 = arith.addf %106, %120 : vector<4x8x128xf32>
      %122 = vector.extract_strided_slice %6 {offsets = [0, 7, 0], sizes = [4, 1, 128], strides = [1, 1, 1]} : vector<4x8x128xf32> to vector<4x1x128xf32>
      %c7 = arith.constant 7 : index
      %c0_45 = arith.constant 0 : index
      %c0_46 = arith.constant 0 : index
      %123 = vector.load %arg3[%c7, %c0_45, %c0_46] : memref<16x16x128xf32, #tpu.memory_space<vmem>>, vector<1x8x128xf32>
      %124 = vector.shape_cast %123 : vector<1x8x128xf32> to vector<8x128xf32>
      %125 = vector.shape_cast %124 : vector<8x128xf32> to vector<1x8x128xf32>
      %126 = vector.broadcast %122 : vector<4x1x128xf32> to vector<4x8x128xf32>
      %127 = vector.broadcast %125 : vector<1x8x128xf32> to vector<4x8x128xf32>
      %128 = arith.mulf %126, %127 : vector<4x8x128xf32>
      %129 = arith.addf %114, %128 : vector<4x8x128xf32>
      %c7_47 = arith.constant 7 : index
      %c8_48 = arith.constant 8 : index
      %c0_49 = arith.constant 0 : index
      %130 = vector.load %arg3[%c7_47, %c8_48, %c0_49] : memref<16x16x128xf32, #tpu.memory_space<vmem>>, vector<1x8x128xf32>
      %131 = vector.shape_cast %130 : vector<1x8x128xf32> to vector<8x128xf32>
      %132 = vector.shape_cast %131 : vector<8x128xf32> to vector<1x8x128xf32>
      %133 = vector.broadcast %122 : vector<4x1x128xf32> to vector<4x8x128xf32>
      %134 = vector.broadcast %132 : vector<1x8x128xf32> to vector<4x8x128xf32>
      %135 = arith.mulf %133, %134 : vector<4x8x128xf32>
      %136 = arith.addf %121, %135 : vector<4x8x128xf32>
      %137 = vector.extract_strided_slice %8 {offsets = [0, 0, 0], sizes = [4, 1, 128], strides = [1, 1, 1]} : vector<4x8x128xf32> to vector<4x1x128xf32>
      %c8_50 = arith.constant 8 : index
      %c0_51 = arith.constant 0 : index
      %c0_52 = arith.constant 0 : index
      %138 = vector.load %arg3[%c8_50, %c0_51, %c0_52] : memref<16x16x128xf32, #tpu.memory_space<vmem>>, vector<1x8x128xf32>
      %139 = vector.shape_cast %138 : vector<1x8x128xf32> to vector<8x128xf32>
      %140 = vector.shape_cast %139 : vector<8x128xf32> to vector<1x8x128xf32>
      %141 = vector.broadcast %137 : vector<4x1x128xf32> to vector<4x8x128xf32>
      %142 = vector.broadcast %140 : vector<1x8x128xf32> to vector<4x8x128xf32>
      %143 = arith.mulf %141, %142 : vector<4x8x128xf32>
      %144 = arith.addf %129, %143 : vector<4x8x128xf32>
      %c8_53 = arith.constant 8 : index
      %c8_54 = arith.constant 8 : index
      %c0_55 = arith.constant 0 : index
      %145 = vector.load %arg3[%c8_53, %c8_54, %c0_55] : memref<16x16x128xf32, #tpu.memory_space<vmem>>, vector<1x8x128xf32>
      %146 = vector.shape_cast %145 : vector<1x8x128xf32> to vector<8x128xf32>
      %147 = vector.shape_cast %146 : vector<8x128xf32> to vector<1x8x128xf32>
      %148 = vector.broadcast %137 : vector<4x1x128xf32> to vector<4x8x128xf32>
      %149 = vector.broadcast %147 : vector<1x8x128xf32> to vector<4x8x128xf32>
      %150 = arith.mulf %148, %149 : vector<4x8x128xf32>
      %151 = arith.addf %136, %150 : vector<4x8x128xf32>
      %152 = vector.extract_strided_slice %8 {offsets = [0, 1, 0], sizes = [4, 1, 128], strides = [1, 1, 1]} : vector<4x8x128xf32> to vector<4x1x128xf32>
      %c9 = arith.constant 9 : index
      %c0_56 = arith.constant 0 : index
      %c0_57 = arith.constant 0 : index
      %153 = vector.load %arg3[%c9, %c0_56, %c0_57] : memref<16x16x128xf32, #tpu.memory_space<vmem>>, vector<1x8x128xf32>
      %154 = vector.shape_cast %153 : vector<1x8x128xf32> to vector<8x128xf32>
      %155 = vector.shape_cast %154 : vector<8x128xf32> to vector<1x8x128xf32>
      %156 = vector.broadcast %152 : vector<4x1x128xf32> to vector<4x8x128xf32>
      %157 = vector.broadcast %155 : vector<1x8x128xf32> to vector<4x8x128xf32>
      %158 = arith.mulf %156, %157 : vector<4x8x128xf32>
      %159 = arith.addf %144, %158 : vector<4x8x128xf32>
      %c9_58 = arith.constant 9 : index
      %c8_59 = arith.constant 8 : index
      %c0_60 = arith.constant 0 : index
      %160 = vector.load %arg3[%c9_58, %c8_59, %c0_60] : memref<16x16x128xf32, #tpu.memory_space<vmem>>, vector<1x8x128xf32>
      %161 = vector.shape_cast %160 : vector<1x8x128xf32> to vector<8x128xf32>
      %162 = vector.shape_cast %161 : vector<8x128xf32> to vector<1x8x128xf32>
      %163 = vector.broadcast %152 : vector<4x1x128xf32> to vector<4x8x128xf32>
      %164 = vector.broadcast %162 : vector<1x8x128xf32> to vector<4x8x128xf32>
      %165 = arith.mulf %163, %164 : vector<4x8x128xf32>
      %166 = arith.addf %151, %165 : vector<4x8x128xf32>
      %167 = vector.extract_strided_slice %8 {offsets = [0, 2, 0], sizes = [4, 1, 128], strides = [1, 1, 1]} : vector<4x8x128xf32> to vector<4x1x128xf32>
      %c10 = arith.constant 10 : index
      %c0_61 = arith.constant 0 : index
      %c0_62 = arith.constant 0 : index
      %168 = vector.load %arg3[%c10, %c0_61, %c0_62] : memref<16x16x128xf32, #tpu.memory_space<vmem>>, vector<1x8x128xf32>
      %169 = vector.shape_cast %168 : vector<1x8x128xf32> to vector<8x128xf32>
      %170 = vector.shape_cast %169 : vector<8x128xf32> to vector<1x8x128xf32>
      %171 = vector.broadcast %167 : vector<4x1x128xf32> to vector<4x8x128xf32>
      %172 = vector.broadcast %170 : vector<1x8x128xf32> to vector<4x8x128xf32>
      %173 = arith.mulf %171, %172 : vector<4x8x128xf32>
      %174 = arith.addf %159, %173 : vector<4x8x128xf32>
      %c10_63 = arith.constant 10 : index
      %c8_64 = arith.constant 8 : index
      %c0_65 = arith.constant 0 : index
      %175 = vector.load %arg3[%c10_63, %c8_64, %c0_65] : memref<16x16x128xf32, #tpu.memory_space<vmem>>, vector<1x8x128xf32>
      %176 = vector.shape_cast %175 : vector<1x8x128xf32> to vector<8x128xf32>
      %177 = vector.shape_cast %176 : vector<8x128xf32> to vector<1x8x128xf32>
      %178 = vector.broadcast %167 : vector<4x1x128xf32> to vector<4x8x128xf32>
      %179 = vector.broadcast %177 : vector<1x8x128xf32> to vector<4x8x128xf32>
      %180 = arith.mulf %178, %179 : vector<4x8x128xf32>
      %181 = arith.addf %166, %180 : vector<4x8x128xf32>
      %182 = vector.extract_strided_slice %8 {offsets = [0, 3, 0], sizes = [4, 1, 128], strides = [1, 1, 1]} : vector<4x8x128xf32> to vector<4x1x128xf32>
      %c11 = arith.constant 11 : index
      %c0_66 = arith.constant 0 : index
      %c0_67 = arith.constant 0 : index
      %183 = vector.load %arg3[%c11, %c0_66, %c0_67] : memref<16x16x128xf32, #tpu.memory_space<vmem>>, vector<1x8x128xf32>
      %184 = vector.shape_cast %183 : vector<1x8x128xf32> to vector<8x128xf32>
      %185 = vector.shape_cast %184 : vector<8x128xf32> to vector<1x8x128xf32>
      %186 = vector.broadcast %182 : vector<4x1x128xf32> to vector<4x8x128xf32>
      %187 = vector.broadcast %185 : vector<1x8x128xf32> to vector<4x8x128xf32>
      %188 = arith.mulf %186, %187 : vector<4x8x128xf32>
      %189 = arith.addf %174, %188 : vector<4x8x128xf32>
      %c11_68 = arith.constant 11 : index
      %c8_69 = arith.constant 8 : index
      %c0_70 = arith.constant 0 : index
      %190 = vector.load %arg3[%c11_68, %c8_69, %c0_70] : memref<16x16x128xf32, #tpu.memory_space<vmem>>, vector<1x8x128xf32>
      %191 = vector.shape_cast %190 : vector<1x8x128xf32> to vector<8x128xf32>
      %192 = vector.shape_cast %191 : vector<8x128xf32> to vector<1x8x128xf32>
      %193 = vector.broadcast %182 : vector<4x1x128xf32> to vector<4x8x128xf32>
      %194 = vector.broadcast %192 : vector<1x8x128xf32> to vector<4x8x128xf32>
      %195 = arith.mulf %193, %194 : vector<4x8x128xf32>
      %196 = arith.addf %181, %195 : vector<4x8x128xf32>
      %197 = vector.extract_strided_slice %8 {offsets = [0, 4, 0], sizes = [4, 1, 128], strides = [1, 1, 1]} : vector<4x8x128xf32> to vector<4x1x128xf32>
      %c12 = arith.constant 12 : index
      %c0_71 = arith.constant 0 : index
      %c0_72 = arith.constant 0 : index
      %198 = vector.load %arg3[%c12, %c0_71, %c0_72] : memref<16x16x128xf32, #tpu.memory_space<vmem>>, vector<1x8x128xf32>
      %199 = vector.shape_cast %198 : vector<1x8x128xf32> to vector<8x128xf32>
      %200 = vector.shape_cast %199 : vector<8x128xf32> to vector<1x8x128xf32>
      %201 = vector.broadcast %197 : vector<4x1x128xf32> to vector<4x8x128xf32>
      %202 = vector.broadcast %200 : vector<1x8x128xf32> to vector<4x8x128xf32>
      %203 = arith.mulf %201, %202 : vector<4x8x128xf32>
      %204 = arith.addf %189, %203 : vector<4x8x128xf32>
      %c12_73 = arith.constant 12 : index
      %c8_74 = arith.constant 8 : index
      %c0_75 = arith.constant 0 : index
      %205 = vector.load %arg3[%c12_73, %c8_74, %c0_75] : memref<16x16x128xf32, #tpu.memory_space<vmem>>, vector<1x8x128xf32>
      %206 = vector.shape_cast %205 : vector<1x8x128xf32> to vector<8x128xf32>
      %207 = vector.shape_cast %206 : vector<8x128xf32> to vector<1x8x128xf32>
      %208 = vector.broadcast %197 : vector<4x1x128xf32> to vector<4x8x128xf32>
      %209 = vector.broadcast %207 : vector<1x8x128xf32> to vector<4x8x128xf32>
      %210 = arith.mulf %208, %209 : vector<4x8x128xf32>
      %211 = arith.addf %196, %210 : vector<4x8x128xf32>
      %212 = vector.extract_strided_slice %8 {offsets = [0, 5, 0], sizes = [4, 1, 128], strides = [1, 1, 1]} : vector<4x8x128xf32> to vector<4x1x128xf32>
      %c13 = arith.constant 13 : index
      %c0_76 = arith.constant 0 : index
      %c0_77 = arith.constant 0 : index
      %213 = vector.load %arg3[%c13, %c0_76, %c0_77] : memref<16x16x128xf32, #tpu.memory_space<vmem>>, vector<1x8x128xf32>
      %214 = vector.shape_cast %213 : vector<1x8x128xf32> to vector<8x128xf32>
      %215 = vector.shape_cast %214 : vector<8x128xf32> to vector<1x8x128xf32>
      %216 = vector.broadcast %212 : vector<4x1x128xf32> to vector<4x8x128xf32>
      %217 = vector.broadcast %215 : vector<1x8x128xf32> to vector<4x8x128xf32>
      %218 = arith.mulf %216, %217 : vector<4x8x128xf32>
      %219 = arith.addf %204, %218 : vector<4x8x128xf32>
      %c13_78 = arith.constant 13 : index
      %c8_79 = arith.constant 8 : index
      %c0_80 = arith.constant 0 : index
      %220 = vector.load %arg3[%c13_78, %c8_79, %c0_80] : memref<16x16x128xf32, #tpu.memory_space<vmem>>, vector<1x8x128xf32>
      %221 = vector.shape_cast %220 : vector<1x8x128xf32> to vector<8x128xf32>
      %222 = vector.shape_cast %221 : vector<8x128xf32> to vector<1x8x128xf32>
      %223 = vector.broadcast %212 : vector<4x1x128xf32> to vector<4x8x128xf32>
      %224 = vector.broadcast %222 : vector<1x8x128xf32> to vector<4x8x128xf32>
      %225 = arith.mulf %223, %224 : vector<4x8x128xf32>
      %226 = arith.addf %211, %225 : vector<4x8x128xf32>
      %227 = vector.extract_strided_slice %8 {offsets = [0, 6, 0], sizes = [4, 1, 128], strides = [1, 1, 1]} : vector<4x8x128xf32> to vector<4x1x128xf32>
      %c14 = arith.constant 14 : index
      %c0_81 = arith.constant 0 : index
      %c0_82 = arith.constant 0 : index
      %228 = vector.load %arg3[%c14, %c0_81, %c0_82] : memref<16x16x128xf32, #tpu.memory_space<vmem>>, vector<1x8x128xf32>
      %229 = vector.shape_cast %228 : vector<1x8x128xf32> to vector<8x128xf32>
      %230 = vector.shape_cast %229 : vector<8x128xf32> to vector<1x8x128xf32>
      %231 = vector.broadcast %227 : vector<4x1x128xf32> to vector<4x8x128xf32>
      %232 = vector.broadcast %230 : vector<1x8x128xf32> to vector<4x8x128xf32>
      %233 = arith.mulf %231, %232 : vector<4x8x128xf32>
      %234 = arith.addf %219, %233 : vector<4x8x128xf32>
      %c14_83 = arith.constant 14 : index
      %c8_84 = arith.constant 8 : index
      %c0_85 = arith.constant 0 : index
      %235 = vector.load %arg3[%c14_83, %c8_84, %c0_85] : memref<16x16x128xf32, #tpu.memory_space<vmem>>, vector<1x8x128xf32>
      %236 = vector.shape_cast %235 : vector<1x8x128xf32> to vector<8x128xf32>
      %237 = vector.shape_cast %236 : vector<8x128xf32> to vector<1x8x128xf32>
      %238 = vector.broadcast %227 : vector<4x1x128xf32> to vector<4x8x128xf32>
      %239 = vector.broadcast %237 : vector<1x8x128xf32> to vector<4x8x128xf32>
      %240 = arith.mulf %238, %239 : vector<4x8x128xf32>
      %241 = arith.addf %226, %240 : vector<4x8x128xf32>
      %242 = vector.extract_strided_slice %8 {offsets = [0, 7, 0], sizes = [4, 1, 128], strides = [1, 1, 1]} : vector<4x8x128xf32> to vector<4x1x128xf32>
      %c15 = arith.constant 15 : index
      %c0_86 = arith.constant 0 : index
      %c0_87 = arith.constant 0 : index
      %243 = vector.load %arg3[%c15, %c0_86, %c0_87] : memref<16x16x128xf32, #tpu.memory_space<vmem>>, vector<1x8x128xf32>
      %244 = vector.shape_cast %243 : vector<1x8x128xf32> to vector<8x128xf32>
      %245 = vector.shape_cast %244 : vector<8x128xf32> to vector<1x8x128xf32>
      %246 = vector.broadcast %242 : vector<4x1x128xf32> to vector<4x8x128xf32>
      %247 = vector.broadcast %245 : vector<1x8x128xf32> to vector<4x8x128xf32>
      %248 = arith.mulf %246, %247 : vector<4x8x128xf32>
      %249 = arith.addf %234, %248 : vector<4x8x128xf32>
      %c15_88 = arith.constant 15 : index
      %c8_89 = arith.constant 8 : index
      %c0_90 = arith.constant 0 : index
      %250 = vector.load %arg3[%c15_88, %c8_89, %c0_90] : memref<16x16x128xf32, #tpu.memory_space<vmem>>, vector<1x8x128xf32>
      %251 = vector.shape_cast %250 : vector<1x8x128xf32> to vector<8x128xf32>
      %252 = vector.shape_cast %251 : vector<8x128xf32> to vector<1x8x128xf32>
      %253 = vector.broadcast %242 : vector<4x1x128xf32> to vector<4x8x128xf32>
      %254 = vector.broadcast %252 : vector<1x8x128xf32> to vector<4x8x128xf32>
      %255 = arith.mulf %253, %254 : vector<4x8x128xf32>
      %256 = arith.addf %241, %255 : vector<4x8x128xf32>
      %257 = vector.extract_strided_slice %249 {offsets = [0, 0, 0], sizes = [1, 8, 128], strides = [1, 1, 1]} : vector<4x8x128xf32> to vector<1x8x128xf32>
      %258 = vector.shape_cast %257 : vector<1x8x128xf32> to vector<8x128xf32>
      %259 = vector.shape_cast %258 : vector<8x128xf32> to vector<1x8x128xf32>
      %260 = vector.broadcast %259 : vector<1x8x128xf32> to vector<4x8x128xf32>
      %261 = arith.mulf %6, %260 : vector<4x8x128xf32>
      %cst = arith.constant dense<0.000000e+00> : vector<4x128xf32>
      %262 = vector.multi_reduction <add>, %261, %cst [1] : vector<4x8x128xf32> to vector<4x128xf32>
      %263 = vector.shape_cast %262 : vector<4x128xf32> to vector<4x1x128xf32>
      %264 = vector.extract_strided_slice %256 {offsets = [0, 0, 0], sizes = [1, 8, 128], strides = [1, 1, 1]} : vector<4x8x128xf32> to vector<1x8x128xf32>
      %265 = vector.shape_cast %264 : vector<1x8x128xf32> to vector<8x128xf32>
      %266 = vector.shape_cast %265 : vector<8x128xf32> to vector<1x8x128xf32>
      %267 = vector.broadcast %266 : vector<1x8x128xf32> to vector<4x8x128xf32>
      %268 = arith.mulf %8, %267 : vector<4x8x128xf32>
      %cst_91 = arith.constant dense<0.000000e+00> : vector<4x128xf32>
      %269 = vector.multi_reduction <add>, %268, %cst_91 [1] : vector<4x8x128xf32> to vector<4x128xf32>
      %270 = vector.shape_cast %269 : vector<4x128xf32> to vector<4x1x128xf32>
      %271 = arith.addf %263, %270 : vector<4x1x128xf32>
      %272 = vector.extract_strided_slice %249 {offsets = [1, 0, 0], sizes = [1, 8, 128], strides = [1, 1, 1]} : vector<4x8x128xf32> to vector<1x8x128xf32>
      %273 = vector.shape_cast %272 : vector<1x8x128xf32> to vector<8x128xf32>
      %274 = vector.shape_cast %273 : vector<8x128xf32> to vector<1x8x128xf32>
      %275 = vector.broadcast %274 : vector<1x8x128xf32> to vector<4x8x128xf32>
      %276 = arith.mulf %6, %275 : vector<4x8x128xf32>
      %cst_92 = arith.constant dense<0.000000e+00> : vector<4x128xf32>
      %277 = vector.multi_reduction <add>, %276, %cst_92 [1] : vector<4x8x128xf32> to vector<4x128xf32>
      %278 = vector.shape_cast %277 : vector<4x128xf32> to vector<4x1x128xf32>
      %279 = vector.extract_strided_slice %256 {offsets = [1, 0, 0], sizes = [1, 8, 128], strides = [1, 1, 1]} : vector<4x8x128xf32> to vector<1x8x128xf32>
      %280 = vector.shape_cast %279 : vector<1x8x128xf32> to vector<8x128xf32>
      %281 = vector.shape_cast %280 : vector<8x128xf32> to vector<1x8x128xf32>
      %282 = vector.broadcast %281 : vector<1x8x128xf32> to vector<4x8x128xf32>
      %283 = arith.mulf %8, %282 : vector<4x8x128xf32>
      %cst_93 = arith.constant dense<0.000000e+00> : vector<4x128xf32>
      %284 = vector.multi_reduction <add>, %283, %cst_93 [1] : vector<4x8x128xf32> to vector<4x128xf32>
      %285 = vector.shape_cast %284 : vector<4x128xf32> to vector<4x1x128xf32>
      %286 = arith.addf %278, %285 : vector<4x1x128xf32>
      %287 = vector.extract_strided_slice %249 {offsets = [2, 0, 0], sizes = [1, 8, 128], strides = [1, 1, 1]} : vector<4x8x128xf32> to vector<1x8x128xf32>
      %288 = vector.shape_cast %287 : vector<1x8x128xf32> to vector<8x128xf32>
      %289 = vector.shape_cast %288 : vector<8x128xf32> to vector<1x8x128xf32>
      %290 = vector.broadcast %289 : vector<1x8x128xf32> to vector<4x8x128xf32>
      %291 = arith.mulf %6, %290 : vector<4x8x128xf32>
      %cst_94 = arith.constant dense<0.000000e+00> : vector<4x128xf32>
      %292 = vector.multi_reduction <add>, %291, %cst_94 [1] : vector<4x8x128xf32> to vector<4x128xf32>
      %293 = vector.shape_cast %292 : vector<4x128xf32> to vector<4x1x128xf32>
      %294 = vector.extract_strided_slice %256 {offsets = [2, 0, 0], sizes = [1, 8, 128], strides = [1, 1, 1]} : vector<4x8x128xf32> to vector<1x8x128xf32>
      %295 = vector.shape_cast %294 : vector<1x8x128xf32> to vector<8x128xf32>
      %296 = vector.shape_cast %295 : vector<8x128xf32> to vector<1x8x128xf32>
      %297 = vector.broadcast %296 : vector<1x8x128xf32> to vector<4x8x128xf32>
      %298 = arith.mulf %8, %297 : vector<4x8x128xf32>
      %cst_95 = arith.constant dense<0.000000e+00> : vector<4x128xf32>
      %299 = vector.multi_reduction <add>, %298, %cst_95 [1] : vector<4x8x128xf32> to vector<4x128xf32>
      %300 = vector.shape_cast %299 : vector<4x128xf32> to vector<4x1x128xf32>
      %301 = arith.addf %293, %300 : vector<4x1x128xf32>
      %302 = vector.extract_strided_slice %249 {offsets = [3, 0, 0], sizes = [1, 8, 128], strides = [1, 1, 1]} : vector<4x8x128xf32> to vector<1x8x128xf32>
      %303 = vector.shape_cast %302 : vector<1x8x128xf32> to vector<8x128xf32>
      %304 = vector.shape_cast %303 : vector<8x128xf32> to vector<1x8x128xf32>
      %305 = vector.broadcast %304 : vector<1x8x128xf32> to vector<4x8x128xf32>
      %306 = arith.mulf %6, %305 : vector<4x8x128xf32>
      %cst_96 = arith.constant dense<0.000000e+00> : vector<4x128xf32>
      %307 = vector.multi_reduction <add>, %306, %cst_96 [1] : vector<4x8x128xf32> to vector<4x128xf32>
      %308 = vector.shape_cast %307 : vector<4x128xf32> to vector<4x1x128xf32>
      %309 = vector.extract_strided_slice %256 {offsets = [3, 0, 0], sizes = [1, 8, 128], strides = [1, 1, 1]} : vector<4x8x128xf32> to vector<1x8x128xf32>
      %310 = vector.shape_cast %309 : vector<1x8x128xf32> to vector<8x128xf32>
      %311 = vector.shape_cast %310 : vector<8x128xf32> to vector<1x8x128xf32>
      %312 = vector.broadcast %311 : vector<1x8x128xf32> to vector<4x8x128xf32>
      %313 = arith.mulf %8, %312 : vector<4x8x128xf32>
      %cst_97 = arith.constant dense<0.000000e+00> : vector<4x128xf32>
      %314 = vector.multi_reduction <add>, %313, %cst_97 [1] : vector<4x8x128xf32> to vector<4x128xf32>
      %315 = vector.shape_cast %314 : vector<4x128xf32> to vector<4x1x128xf32>
      %316 = arith.addf %308, %315 : vector<4x1x128xf32>
      %317 = arith.maximumf %271, %286 : vector<4x1x128xf32>
      %318 = arith.maximumf %317, %301 : vector<4x1x128xf32>
      %319 = arith.maximumf %318, %316 : vector<4x1x128xf32>
      %320 = arith.subf %271, %319 : vector<4x1x128xf32>
      %321 = math.exp %320 : vector<4x1x128xf32>
      %322 = arith.subf %286, %319 : vector<4x1x128xf32>
      %323 = math.exp %322 : vector<4x1x128xf32>
      %324 = arith.subf %301, %319 : vector<4x1x128xf32>
      %325 = math.exp %324 : vector<4x1x128xf32>
      %326 = arith.subf %316, %319 : vector<4x1x128xf32>
      %327 = math.exp %326 : vector<4x1x128xf32>
      %328 = arith.addf %321, %323 : vector<4x1x128xf32>
      %329 = arith.addf %328, %325 : vector<4x1x128xf32>
      %330 = arith.addf %329, %327 : vector<4x1x128xf32>
      %331 = tpu.reciprocal %330 : vector<4x1x128xf32> -> vector<4x1x128xf32>
      %332 = arith.mulf %321, %331 : vector<4x1x128xf32>
      %333 = vector.extract_strided_slice %6 {offsets = [0, 0, 0], sizes = [1, 8, 128], strides = [1, 1, 1]} : vector<4x8x128xf32> to vector<1x8x128xf32>
      %334 = vector.shape_cast %333 : vector<1x8x128xf32> to vector<8x128xf32>
      %335 = vector.shape_cast %334 : vector<8x128xf32> to vector<1x8x128xf32>
      %336 = vector.broadcast %332 : vector<4x1x128xf32> to vector<4x8x128xf32>
      %337 = vector.broadcast %335 : vector<1x8x128xf32> to vector<4x8x128xf32>
      %338 = arith.mulf %336, %337 : vector<4x8x128xf32>
      %339 = vector.extract_strided_slice %8 {offsets = [0, 0, 0], sizes = [1, 8, 128], strides = [1, 1, 1]} : vector<4x8x128xf32> to vector<1x8x128xf32>
      %340 = vector.shape_cast %339 : vector<1x8x128xf32> to vector<8x128xf32>
      %341 = vector.shape_cast %340 : vector<8x128xf32> to vector<1x8x128xf32>
      %342 = vector.broadcast %332 : vector<4x1x128xf32> to vector<4x8x128xf32>
      %343 = vector.broadcast %341 : vector<1x8x128xf32> to vector<4x8x128xf32>
      %344 = arith.mulf %342, %343 : vector<4x8x128xf32>
      %345 = arith.mulf %323, %331 : vector<4x1x128xf32>
      %346 = vector.extract_strided_slice %6 {offsets = [1, 0, 0], sizes = [1, 8, 128], strides = [1, 1, 1]} : vector<4x8x128xf32> to vector<1x8x128xf32>
      %347 = vector.shape_cast %346 : vector<1x8x128xf32> to vector<8x128xf32>
      %348 = vector.shape_cast %347 : vector<8x128xf32> to vector<1x8x128xf32>
      %349 = vector.broadcast %345 : vector<4x1x128xf32> to vector<4x8x128xf32>
      %350 = vector.broadcast %348 : vector<1x8x128xf32> to vector<4x8x128xf32>
      %351 = arith.mulf %349, %350 : vector<4x8x128xf32>
      %352 = arith.addf %338, %351 : vector<4x8x128xf32>
      %353 = vector.extract_strided_slice %8 {offsets = [1, 0, 0], sizes = [1, 8, 128], strides = [1, 1, 1]} : vector<4x8x128xf32> to vector<1x8x128xf32>
      %354 = vector.shape_cast %353 : vector<1x8x128xf32> to vector<8x128xf32>
      %355 = vector.shape_cast %354 : vector<8x128xf32> to vector<1x8x128xf32>
      %356 = vector.broadcast %345 : vector<4x1x128xf32> to vector<4x8x128xf32>
      %357 = vector.broadcast %355 : vector<1x8x128xf32> to vector<4x8x128xf32>
      %358 = arith.mulf %356, %357 : vector<4x8x128xf32>
      %359 = arith.addf %344, %358 : vector<4x8x128xf32>
      %360 = arith.mulf %325, %331 : vector<4x1x128xf32>
      %361 = vector.extract_strided_slice %6 {offsets = [2, 0, 0], sizes = [1, 8, 128], strides = [1, 1, 1]} : vector<4x8x128xf32> to vector<1x8x128xf32>
      %362 = vector.shape_cast %361 : vector<1x8x128xf32> to vector<8x128xf32>
      %363 = vector.shape_cast %362 : vector<8x128xf32> to vector<1x8x128xf32>
      %364 = vector.broadcast %360 : vector<4x1x128xf32> to vector<4x8x128xf32>
      %365 = vector.broadcast %363 : vector<1x8x128xf32> to vector<4x8x128xf32>
      %366 = arith.mulf %364, %365 : vector<4x8x128xf32>
      %367 = arith.addf %352, %366 : vector<4x8x128xf32>
      %368 = vector.extract_strided_slice %8 {offsets = [2, 0, 0], sizes = [1, 8, 128], strides = [1, 1, 1]} : vector<4x8x128xf32> to vector<1x8x128xf32>
      %369 = vector.shape_cast %368 : vector<1x8x128xf32> to vector<8x128xf32>
      %370 = vector.shape_cast %369 : vector<8x128xf32> to vector<1x8x128xf32>
      %371 = vector.broadcast %360 : vector<4x1x128xf32> to vector<4x8x128xf32>
      %372 = vector.broadcast %370 : vector<1x8x128xf32> to vector<4x8x128xf32>
      %373 = arith.mulf %371, %372 : vector<4x8x128xf32>
      %374 = arith.addf %359, %373 : vector<4x8x128xf32>
      %375 = arith.mulf %327, %331 : vector<4x1x128xf32>
      %376 = vector.extract_strided_slice %6 {offsets = [3, 0, 0], sizes = [1, 8, 128], strides = [1, 1, 1]} : vector<4x8x128xf32> to vector<1x8x128xf32>
      %377 = vector.shape_cast %376 : vector<1x8x128xf32> to vector<8x128xf32>
      %378 = vector.shape_cast %377 : vector<8x128xf32> to vector<1x8x128xf32>
      %379 = vector.broadcast %375 : vector<4x1x128xf32> to vector<4x8x128xf32>
      %380 = vector.broadcast %378 : vector<1x8x128xf32> to vector<4x8x128xf32>
      %381 = arith.mulf %379, %380 : vector<4x8x128xf32>
      %382 = arith.addf %367, %381 : vector<4x8x128xf32>
      %383 = vector.extract_strided_slice %8 {offsets = [3, 0, 0], sizes = [1, 8, 128], strides = [1, 1, 1]} : vector<4x8x128xf32> to vector<1x8x128xf32>
      %384 = vector.shape_cast %383 : vector<1x8x128xf32> to vector<8x128xf32>
      %385 = vector.shape_cast %384 : vector<8x128xf32> to vector<1x8x128xf32>
      %386 = vector.broadcast %375 : vector<4x1x128xf32> to vector<4x8x128xf32>
      %387 = vector.broadcast %385 : vector<1x8x128xf32> to vector<4x8x128xf32>
      %388 = arith.mulf %386, %387 : vector<4x8x128xf32>
      %389 = arith.addf %374, %388 : vector<4x8x128xf32>
      %c0_98 = arith.constant 0 : index
      %c0_99 = arith.constant 0 : index
      %390 = arith.index_cast %4 : i32 to index
      %391 = vector.load %arg5[%c0_98, %c0_99, %390] : memref<4x16x1024xf32, #tpu.memory_space<vmem>>, vector<4x8x128xf32>
      tpu.vector_store %arg5[%c0_98, %c0_99, %390], %382 {strides = array<i32>} : memref<4x16x1024xf32, #tpu.memory_space<vmem>>, vector<4x8x128xf32>,
      %c0_100 = arith.constant 0 : index
      %c8_101 = arith.constant 8 : index
      %392 = arith.index_cast %4 : i32 to index
      %393 = vector.load %arg5[%c0_100, %c8_101, %392] : memref<4x16x1024xf32, #tpu.memory_space<vmem>>, vector<4x8x128xf32>
      tpu.vector_store %arg5[%c0_100, %c8_101, %392], %389 {strides = array<i32>} : memref<4x16x1024xf32, #tpu.memory_space<vmem>>, vector<4x8x128xf32>,
    }
    %c8_i32_0 = arith.constant 8 : i32
    return
  }
  func.func @transform_0(%arg0: i32) -> (i32, i32, i32) {
    %c0_i32 = arith.constant 0 : i32
    %c0_i32_0 = arith.constant 0 : i32
    %c0_i32_1 = arith.constant 0 : i32
    return %c0_i32, %c0_i32_0, %arg0 : i32, i32, i32
  }
  func.func @transform_1(%arg0: i32) -> (i32, i32, i32) {
    %c0_i32 = arith.constant 0 : i32
    %c0_i32_0 = arith.constant 0 : i32
    %c0_i32_1 = arith.constant 0 : i32
    return %c0_i32, %c0_i32_0, %arg0 : i32, i32, i32
  }
  func.func @transform_2(%arg0: i32) -> (i32, i32, i32) {
    %c0_i32 = arith.constant 0 : i32
    %c0_i32_0 = arith.constant 0 : i32
    %c0_i32_1 = arith.constant 0 : i32
    %c0_i32_2 = arith.constant 0 : i32
    return %c0_i32, %c0_i32_0, %c0_i32_1 : i32, i32, i32
  }
  func.func @transform_3(%arg0: i32) -> (i32, i32) {
    %c0_i32 = arith.constant 0 : i32
    %c0_i32_0 = arith.constant 0 : i32
    %c0_i32_1 = arith.constant 0 : i32
    return %c0_i32, %c0_i32_0 : i32, i32
  }
  func.func @transform_4(%arg0: i32) -> (i32, i32, i32) {
    %c0_i32 = arith.constant 0 : i32
    %c0_i32_0 = arith.constant 0 : i32
    %c0_i32_1 = arith.constant 0 : i32
    return %c0_i32, %c0_i32_0, %arg0 : i32, i32, i32
  }
}

</mosaic_0001>

<bundles_post_ra>
// kernel: sdpa_model.1
= control target key start
LH: loop header
LB: loop body
LE: loop exit
PB: predicated region body
PF: predicated region fallthrough
CT: control target
= control target key end

     0   :  { %s1790_s15 = smov 0   ;;  %s1792_s16 = smov 0   ;;  %s2581_s0 = inlined_call_operand.vmem [shape: f32[4,8,2048], index: 0, kind: input, shape index: {}]   ;;  %s2582_s1 = inlined_call_operand.vmem [shape: f32[4,8,2048], index: 1, kind: input, shape index: {}]   ;;  %s2583_s2 = inlined_call_operand.vmem [shape: f32[16,16,128], index: 2, kind: input, shape index: {}]   ;;  %s2584_s3 = inlined_call_operand.vmem [shape: f32[16,128], index: 3, kind: input, shape index: {}]   ;;  %s2585_s4 = inlined_call_operand.vmem [shape: f32[4,16,2048], index: 4, kind: output, shape index: {}]  }
   0x1   :  { %s1794_s17 = smov 0  }
   0x2 LB: > { %s1597_s18 = sadd.s32 4294967295, %s1759_s17   ;;  %s1807_s19 = sadd.s32 1, %s1759_s17   ;;  %s1759_s17 = sphi %s1794_s17, %s2590_s17   ;;  %s1755_s16 = sphi %s1792_s16, %s2589_s16   ;;  %s1751_s15 = sphi %s1790_s15, %s2588_s15  }
   0x3   : > { %s18_s20 = ssub.s32 %s1759_s17, %s1807_s19  ;;  %s21_s21 = sadd.s32 1, %s1755_s16 }
   0x4   : > { %p19_p0 = scmp.eq.s32.totalorder %s18_s20, 0  ;;  %p28_p1 = scmp.ne.s32.totalorder %s1755_s16, %s1751_s15 }
   0x5   : > { %p29_p2 = scmp.eq.s32.totalorder %s1759_s17, 0  ;;  %p126_p3 = scmp.eq.s32.totalorder %s1597_s18, 1 }
   0x6   : > { %s1818_s22 = scalar_select %p19_p0, %s1755_s16, %s21_s21  }
   0x7   : > { %p1820_p4 = por %p29_p2, %p28_p1  ;;  %p1824_p5 = por %p126_p3, %p28_p1 }
   0x8   : > { %p1600_p6 = scmp.ge.s32.totalorder %s1759_s17, 2 }
   0xa   : > { %154 = sbr.rel (%p1600_p6) target bundleno = 55 (0x37), region = 24 }
   0xf   : > { %157 = sbr.rel (!%p1820_p4) target bundleno = 35 (0x23), region = 28  ;;  %s159_s25 = sand.u32 (%p1820_p4), 1, %s1755_s16  }
  0x10   : > { %s1650_s26 = sshll.u32 (%p1820_p4), %s1759_s17, 6  ;;  %s1601_s27 = sshll.u32 (%p1820_p4), %s159_s25, 8 }
  0x11   : > { %s1836_s30 = scalar_lea.vmem (%p1820_p4), %s2581_s0, %s1650_s26  ;;  %s1841_s5 = scalar_lea.vmem (%p1820_p4), [#allocation2], %s1601_s27 }
  0x12   : > { %v177_v0 = vld [vmem:[%s1836_s30] sm:$0xff] (%p1820_p4)  ;;  %v179_v1 = vld [vmem:[%s1836_s30 + $0x8] sm:$0xff] (%p1820_p4)  ;;  %v181_v2 = vld [vmem:[%s1836_s30 + $0x10] sm:$0xff] (%p1820_p4) }
  0x13   : > { %178 = vst [vmem:[%s1841_s5] sm:$0xff] (%p1820_p4), %v177_v0  ;;  %180 = vst [vmem:[%s1841_s5 + $0x8] sm:$0xff] (%p1820_p4), %v179_v1  ;;  %v183_v3 = vld [vmem:[%s1836_s30 + $0x18] sm:$0xff] (%p1820_p4)  ;;  %v185_v4 = vld [vmem:[%s1836_s30 + $0x20] sm:$0xff] (%p1820_p4) }
  0x14   : > { %182 = vst [vmem:[%s1841_s5 + $0x10] sm:$0xff] %v181_v2  ;;  %v187_v5 = vld [vmem:[%s1836_s30 + $0x28] sm:$0xff]  ;;  %184 = vst [vmem:[%s1841_s5 + $0x18] sm:$0xff] %v183_v3  ;;  %v189_v6 = vld [vmem:[%s1836_s30 + $0x30] sm:$0xff] }
  0x15   : > { %186 = vst [vmem:[%s1841_s5 + $0x20] sm:$0xff] %v185_v4  ;;  %188 = vst [vmem:[%s1841_s5 + $0x28] sm:$0xff] %v187_v5  ;;  %v191_v7 = vld [vmem:[%s1836_s30 + $0x38] sm:$0xff]  ;;  %v193_v8 = vld [vmem:[%s1836_s30 + $0x80] sm:$0xff] }
  0x16   : > { %190 = vst [vmem:[%s1841_s5 + $0x30] sm:$0xff] %v189_v6  ;;  %192 = vst [vmem:[%s1841_s5 + $0x38] sm:$0xff] %v191_v7  ;;  %v195_v9 = vld [vmem:[%s1836_s30 + $0x88] sm:$0xff]  ;;  %v197_v10 = vld [vmem:[%s1836_s30 + $0x90] sm:$0xff] }
  0x17   : > { %194 = vst [vmem:[%s1841_s5 + $0x40] sm:$0xff] %v193_v8  ;;  %v199_v11 = vld [vmem:[%s1836_s30 + $0x98] sm:$0xff]  ;;  %196 = vst [vmem:[%s1841_s5 + $0x48] sm:$0xff] %v195_v9  ;;  %v201_v12 = vld [vmem:[%s1836_s30 + $0xa0] sm:$0xff] }
  0x18   : > { %198 = vst [vmem:[%s1841_s5 + $0x50] sm:$0xff] %v197_v10  ;;  %200 = vst [vmem:[%s1841_s5 + $0x58] sm:$0xff] %v199_v11  ;;  %v203_v13 = vld [vmem:[%s1836_s30 + $0xa8] sm:$0xff]  ;;  %v205_v14 = vld [vmem:[%s1836_s30 + $0xb0] sm:$0xff] }
  0x19   : > { %202 = vst [vmem:[%s1841_s5 + $0x60] sm:$0xff] %v201_v12  ;;  %204 = vst [vmem:[%s1841_s5 + $0x68] sm:$0xff] %v203_v13  ;;  %v207_v15 = vld [vmem:[%s1836_s30 + $0xb8] sm:$0xff]  ;;  %v209_v16 = vld [vmem:[%s1836_s30 + $0x100] sm:$0xff] }
  0x1a   : > { %206 = vst [vmem:[%s1841_s5 + $0x70] sm:$0xff] %v205_v14  ;;  %v211_v17 = vld [vmem:[%s1836_s30 + $0x108] sm:$0xff]  ;;  %208 = vst [vmem:[%s1841_s5 + $0x78] sm:$0xff] %v207_v15  ;;  %v213_v18 = vld [vmem:[%s1836_s30 + $0x110] sm:$0xff] }
  0x1b   : > { %210 = vst [vmem:[%s1841_s5 + $0x80] sm:$0xff] %v209_v16  ;;  %212 = vst [vmem:[%s1841_s5 + $0x88] sm:$0xff] %v211_v17  ;;  %v215_v19 = vld [vmem:[%s1836_s30 + $0x118] sm:$0xff]  ;;  %v217_v20 = vld [vmem:[%s1836_s30 + $0x120] sm:$0xff] }
  0x1c   : > { %214 = vst [vmem:[%s1841_s5 + $0x90] sm:$0xff] %v213_v18  ;;  %216 = vst [vmem:[%s1841_s5 + $0x98] sm:$0xff] %v215_v19  ;;  %v219_v21 = vld [vmem:[%s1836_s30 + $0x128] sm:$0xff]  ;;  %v221_v22 = vld [vmem:[%s1836_s30 + $0x130] sm:$0xff] }
  0x1d   : > { %218 = vst [vmem:[%s1841_s5 + $0xa0] sm:$0xff] %v217_v20  ;;  %v223_v23 = vld [vmem:[%s1836_s30 + $0x138] sm:$0xff]  ;;  %220 = vst [vmem:[%s1841_s5 + $0xa8] sm:$0xff] %v219_v21  ;;  %v225_v24 = vld [vmem:[%s1836_s30 + $0x180] sm:$0xff] }
  0x1e   : > { %222 = vst [vmem:[%s1841_s5 + $0xb0] sm:$0xff] %v221_v22  ;;  %224 = vst [vmem:[%s1841_s5 + $0xb8] sm:$0xff] %v223_v23  ;;  %v227_v25 = vld [vmem:[%s1836_s30 + $0x188] sm:$0xff]  ;;  %v229_v26 = vld [vmem:[%s1836_s30 + $0x190] sm:$0xff] }
  0x1f   : > { %226 = vst [vmem:[%s1841_s5 + $0xc0] sm:$0xff] %v225_v24  ;;  %228 = vst [vmem:[%s1841_s5 + $0xc8] sm:$0xff] %v227_v25  ;;  %v231_v27 = vld [vmem:[%s1836_s30 + $0x198] sm:$0xff]  ;;  %v233_v28 = vld [vmem:[%s1836_s30 + $0x1a0] sm:$0xff] }
  0x20   : > { %230 = vst [vmem:[%s1841_s5 + $0xd0] sm:$0xff] %v229_v26  ;;  %v235_v29 = vld [vmem:[%s1836_s30 + $0x1a8] sm:$0xff]  ;;  %232 = vst [vmem:[%s1841_s5 + $0xd8] sm:$0xff] %v231_v27  ;;  %v237_v30 = vld [vmem:[%s1836_s30 + $0x1b0] sm:$0xff] }
  0x21   : > { %234 = vst [vmem:[%s1841_s5 + $0xe0] sm:$0xff] %v233_v28  ;;  %236 = vst [vmem:[%s1841_s5 + $0xe8] sm:$0xff] %v235_v29  ;;  %v239_v31 = vld [vmem:[%s1836_s30 + $0x1b8] sm:$0xff] }
  0x22   : > { %238 = vst [vmem:[%s1841_s5 + $0xf0] sm:$0xff] %v237_v30  ;;  %240 = vst [vmem:[%s1841_s5 + $0xf8] sm:$0xff] %v239_v31 }
  0x23 PF: > { %246 = sbr.rel (!%p1820_p4) target bundleno = 55 (0x37), region = 51  ;;  %s248_s6 = sand.u32 (%p1820_p4), 1, %s1755_s16  }
  0x24   : > { %s1651_s7 = sshll.u32 (%p1820_p4), %s1759_s17, 6  ;;  %s1604_s8 = sshll.u32 (%p1820_p4), %s248_s6, 8 }
  0x25   : > { %s1911_s11 = scalar_lea.vmem (%p1820_p4), %s2582_s1, %s1651_s7  ;;  %s1916_s12 = scalar_lea.vmem (%p1820_p4), [#allocation3], %s1604_s8 }
  0x26   : > { %v266_v32 = vld [vmem:[%s1911_s11] sm:$0xff] (%p1820_p4)  ;;  %v268_v33 = vld [vmem:[%s1911_s11 + $0x8] sm:$0xff] (%p1820_p4)  ;;  %v270_v34 = vld [vmem:[%s1911_s11 + $0x10] sm:$0xff] (%p1820_p4) }
  0x27   : > { %267 = vst [vmem:[%s1916_s12] sm:$0xff] (%p1820_p4), %v266_v32  ;;  %269 = vst [vmem:[%s1916_s12 + $0x8] sm:$0xff] (%p1820_p4), %v268_v33  ;;  %v272_v35 = vld [vmem:[%s1911_s11 + $0x18] sm:$0xff] (%p1820_p4)  ;;  %v274_v36 = vld [vmem:[%s1911_s11 + $0x20] sm:$0xff] (%p1820_p4) }
  0x28   : > { %271 = vst [vmem:[%s1916_s12 + $0x10] sm:$0xff] %v270_v34  ;;  %v276_v37 = vld [vmem:[%s1911_s11 + $0x28] sm:$0xff]  ;;  %273 = vst [vmem:[%s1916_s12 + $0x18] sm:$0xff] %v272_v35  ;;  %v278_v38 = vld [vmem:[%s1911_s11 + $0x30] sm:$0xff] }
  0x29   : > { %275 = vst [vmem:[%s1916_s12 + $0x20] sm:$0xff] %v274_v36  ;;  %277 = vst [vmem:[%s1916_s12 + $0x28] sm:$0xff] %v276_v37  ;;  %v280_v39 = vld [vmem:[%s1911_s11 + $0x38] sm:$0xff]  ;;  %v282_v40 = vld [vmem:[%s1911_s11 + $0x80] sm:$0xff] }
  0x2a   : > { %279 = vst [vmem:[%s1916_s12 + $0x30] sm:$0xff] %v278_v38  ;;  %281 = vst [vmem:[%s1916_s12 + $0x38] sm:$0xff] %v280_v39  ;;  %v284_v41 = vld [vmem:[%s1911_s11 + $0x88] sm:$0xff]  ;;  %v286_v42 = vld [vmem:[%s1911_s11 + $0x90] sm:$0xff] }
  0x2b   : > { %283 = vst [vmem:[%s1916_s12 + $0x40] sm:$0xff] %v282_v40  ;;  %v288_v43 = vld [vmem:[%s1911_s11 + $0x98] sm:$0xff]  ;;  %285 = vst [vmem:[%s1916_s12 + $0x48] sm:$0xff] %v284_v41  ;;  %v290_v44 = vld [vmem:[%s1911_s11 + $0xa0] sm:$0xff] }
  0x2c   : > { %287 = vst [vmem:[%s1916_s12 + $0x50] sm:$0xff] %v286_v42  ;;  %289 = vst [vmem:[%s1916_s12 + $0x58] sm:$0xff] %v288_v43  ;;  %v292_v45 = vld [vmem:[%s1911_s11 + $0xa8] sm:$0xff]  ;;  %v294_v46 = vld [vmem:[%s1911_s11 + $0xb0] sm:$0xff] }
  0x2d   : > { %291 = vst [vmem:[%s1916_s12 + $0x60] sm:$0xff] %v290_v44  ;;  %293 = vst [vmem:[%s1916_s12 + $0x68] sm:$0xff] %v292_v45  ;;  %v296_v47 = vld [vmem:[%s1911_s11 + $0xb8] sm:$0xff]  ;;  %v298_v48 = vld [vmem:[%s1911_s11 + $0x100] sm:$0xff] }
  0x2e   : > { %295 = vst [vmem:[%s1916_s12 + $0x70] sm:$0xff] %v294_v46  ;;  %v300_v49 = vld [vmem:[%s1911_s11 + $0x108] sm:$0xff]  ;;  %297 = vst [vmem:[%s1916_s12 + $0x78] sm:$0xff] %v296_v47  ;;  %v302_v50 = vld [vmem:[%s1911_s11 + $0x110] sm:$0xff] }
  0x2f   : > { %299 = vst [vmem:[%s1916_s12 + $0x80] sm:$0xff] %v298_v48  ;;  %301 = vst [vmem:[%s1916_s12 + $0x88] sm:$0xff] %v300_v49  ;;  %v304_v51 = vld [vmem:[%s1911_s11 + $0x118] sm:$0xff]  ;;  %v306_v52 = vld [vmem:[%s1911_s11 + $0x120] sm:$0xff] }
  0x30   : > { %303 = vst [vmem:[%s1916_s12 + $0x90] sm:$0xff] %v302_v50  ;;  %305 = vst [vmem:[%s1916_s12 + $0x98] sm:$0xff] %v304_v51  ;;  %v308_v53 = vld [vmem:[%s1911_s11 + $0x128] sm:$0xff]  ;;  %v310_v54 = vld [vmem:[%s1911_s11 + $0x130] sm:$0xff] }
  0x31   : > { %307 = vst [vmem:[%s1916_s12 + $0xa0] sm:$0xff] %v306_v52  ;;  %v312_v55 = vld [vmem:[%s1911_s11 + $0x138] sm:$0xff]  ;;  %309 = vst [vmem:[%s1916_s12 + $0xa8] sm:$0xff] %v308_v53  ;;  %v314_v56 = vld [vmem:[%s1911_s11 + $0x180] sm:$0xff] }
  0x32   : > { %311 = vst [vmem:[%s1916_s12 + $0xb0] sm:$0xff] %v310_v54  ;;  %313 = vst [vmem:[%s1916_s12 + $0xb8] sm:$0xff] %v312_v55  ;;  %v316_v57 = vld [vmem:[%s1911_s11 + $0x188] sm:$0xff]  ;;  %v318_v58 = vld [vmem:[%s1911_s11 + $0x190] sm:$0xff] }
  0x33   : > { %315 = vst [vmem:[%s1916_s12 + $0xc0] sm:$0xff] %v314_v56  ;;  %317 = vst [vmem:[%s1916_s12 + $0xc8] sm:$0xff] %v316_v57  ;;  %v320_v59 = vld [vmem:[%s1911_s11 + $0x198] sm:$0xff]  ;;  %v322_v60 = vld [vmem:[%s1911_s11 + $0x1a0] sm:$0xff] }
  0x34   : > { %319 = vst [vmem:[%s1916_s12 + $0xd0] sm:$0xff] %v318_v58  ;;  %v324_v61 = vld [vmem:[%s1911_s11 + $0x1a8] sm:$0xff]  ;;  %321 = vst [vmem:[%s1916_s12 + $0xd8] sm:$0xff] %v320_v59  ;;  %v326_v62 = vld [vmem:[%s1911_s11 + $0x1b0] sm:$0xff] }
  0x35   : > { %323 = vst [vmem:[%s1916_s12 + $0xe0] sm:$0xff] %v322_v60  ;;  %325 = vst [vmem:[%s1916_s12 + $0xe8] sm:$0xff] %v324_v61  ;;  %v328_v63 = vld [vmem:[%s1911_s11 + $0x1b8] sm:$0xff] }
  0x36   : > { %327 = vst [vmem:[%s1916_s12 + $0xf0] sm:$0xff] %v326_v62  ;;  %329 = vst [vmem:[%s1916_s12 + $0xf8] sm:$0xff] %v328_v63 }
  0x37 PF: > { %p1607_p7 = scmp.ge.s32.totalorder %s1759_s17, 1  ;;  %p334_p8 = scmp.lt.s32.totalorder %s1759_s17, 3 }
  0x39   : > { %p335_p9 = pnand %p1607_p7, %p334_p8 }
  0x3a   : > { %s341_s13 = sand.u32 (!%p335_p9), 1, %s1751_s15   ;;  %s1988_s26 = smov (!%p335_p9), 0  }
  0x3b   : > { %338 = sbr.rel (%p335_p9) target bundleno = 324 (0x144), region = 74  ;;  %s1982_s14 = sshll.u32 (!%p335_p9), %s341_s13, 8 }
  0x3c   : > { %s1610_s20 = sshll.u32 (!%p335_p9), %s341_s13, 9  ;;  %s343_s21 = scalar_lea.vmem (!%p335_p9), [#allocation2], %s1982_s14 }
  0x3d   : > { %s350_s23 = scalar_lea.vmem (!%p335_p9), [#allocation3], %s1982_s14  ;;  %s1986_s25 = scalar_lea.vmem (!%p335_p9), [#allocation4], %s1610_s20 }
  0x40 LB: >> { %v403_v0 = vlaneseq  ;;  %s1611_s15 = sshll.u32 %s1763_s26, 7  ;;  %v402_v4 = vld [vmem:[%s2583_s2] sm:$0xff]  ;;  %v427_v5 = vld [vmem:[%s2583_s2 + $0x8] sm:$0xff]  ;;  %v1614_v34 = vld [vmem:[%s2583_s2 + $0x10] sm:$0xff]  ;;  %s384_s26 = sadd.s32 1, %s1763_s26   ;;  %s1763_s26 = sphi %s1988_s26, %s384_s26  }
  0x41   : >> { %s386_s27 = sshra.s32 %s1611_s15, 7  ;;  %v400_v20 = vld [vmem:[%s2584_s3] sm:$0xff]  ;;  %v401_v21 = vld [vmem:[%s2584_s3 + $0x8] sm:$0xff]  ;;  %v1615_v39 = vld [vmem:[%s2583_s2 + $0x18] sm:$0xff]  ;;  %p381_p10 = scmp.ge.s32.totalorder %s384_s26, 8  }
  0x42   : >> { %v404_v1 = vshrl.u32 %v403_v0, 7  ;;  %s1994_s28 = sshll.u32 %s386_s27, 3  ;;  %v1616_v60 = vld [vmem:[%s2583_s2 + $0x20] sm:$0xff] }
  0x43   : >> { %s2003_s29 = scalar_lea.vmem %s343_s21, %s1994_s28 [#allocation2]  ;;  %s2144_s10 = scalar_lea.vmem %s350_s23, %s1994_s28 [#allocation3] }
  0x44   : >> { %v1996_v2 = vsub.s32 0, %v404_v1  ;;  %v1998_v3 = vsub.s32 1, %v404_v1  ;;  %v2011_v6 = vsub.s32 2, %v404_v1  ;;  %v2013_v7 = vsub.s32 3, %v404_v1  ;;  %v2018_v9 = vld [vmem:[%s2003_s29] sm:$0xff] }
  0x45   : >> { %v2015_v8 = vsub.s32 4, %v404_v1  ;;  %v2021_v10 = vld [vmem:[%s2003_s29 + $0x40] sm:$0xff]  ;;  %v2026_v12 = vsub.s32 5, %v404_v1  ;;  %v2028_v13 = vsub.s32 6, %v404_v1  ;;  %v2030_v14 = vsub.s32 7, %v404_v1  ;;  %v1617_v1 = vld [vmem:[%s2583_s2 + $0x28] sm:$0xff] }
  0x46   : >> { %v2024_v11 = vld [vmem:[%s2003_s29 + $0x80] sm:$0xff]  ;;  %v406_v16 = vrot.slane %v2018_v9, %v1996_v2  ;;  %v410_v17 = vrot.slane %v2021_v10, %v1996_v2  ;;  %v441_v19 = vrot.slane %v2018_v9, %v1998_v3  ;;  %v445_v23 = vrot.slane %v2021_v10, %v1998_v3 }
  0x47   : >> { %v2033_v15 = vld [vmem:[%s2003_s29 + $0xc0] sm:$0xff]  ;;  %v414_v18 = vrot.slane %v2024_v11, %v1996_v2  ;;  %v449_v24 = vrot.slane %v2024_v11, %v1998_v3  ;;  %v476_v61 = vrot.slane %v2018_v9, %v2011_v6  ;;  %v480_v62 = vrot.slane %v2021_v10, %v2011_v6 }
  0x48   : >> { %v418_v22 = vrot.slane %v2033_v15, %v1996_v2  ;;  %v453_v25 = vrot.slane %v2033_v15, %v1998_v3  ;;  %v419_v26 = vmul.f32 %v406_v16, %v402_v4  ;;  %v420_v27 = vmul.f32 %v410_v17, %v402_v4 }
  0x49   : >> { %v421_v28 = vmul.f32 %v414_v18, %v402_v4  ;;  %v428_v29 = vmul.f32 %v427_v5, %v406_v16  ;;  %v429_v31 = vmul.f32 %v427_v5, %v410_v17  ;;  %v430_v32 = vmul.f32 %v427_v5, %v414_v18 }
  0x4a   : >> { %v422_v30 = vmul.f32 %v418_v22, %v402_v4  ;;  %v431_v33 = vmul.f32 %v427_v5, %v418_v22  ;;  %v423_v35 = vadd.f32 %v419_v26, %v400_v20  ;;  %v424_v36 = vadd.f32 %v420_v27, %v400_v20  ;;  %v1618_v26 = vld [vmem:[%s2583_s2 + $0x30] sm:$0xff] }
  0x4b   : >> { %v425_v37 = vadd.f32 %v421_v28, %v400_v20  ;;  %v432_v38 = vadd.f32 %v428_v29, %v401_v21  ;;  %v433_v41 = vadd.f32 %v429_v31, %v401_v21  ;;  %v434_v42 = vadd.f32 %v430_v32, %v401_v21  ;;  %v1619_v31 = vld [vmem:[%s2583_s2 + $0x38] sm:$0xff] }
  0x4c   : >> { %v426_v40 = vadd.f32 %v422_v30, %v400_v20  ;;  %v435_v43 = vadd.f32 %v431_v33, %v401_v21  ;;  %v454_v44 = vmul.f32 %v1614_v34, %v441_v19  ;;  %v455_v45 = vmul.f32 %v1614_v34, %v445_v23 }
  0x4d   : >> { %v456_v46 = vmul.f32 %v1614_v34, %v449_v24  ;;  %v457_v47 = vmul.f32 %v1614_v34, %v453_v25  ;;  %v463_v48 = vmul.f32 %v1615_v39, %v441_v19  ;;  %v464_v49 = vmul.f32 %v1615_v39, %v445_v23 }
  0x4e   : >> { %v465_v50 = vmul.f32 %v1615_v39, %v449_v24  ;;  %v466_v51 = vmul.f32 %v1615_v39, %v453_v25  ;;  %v458_v52 = vadd.f32 %v454_v44, %v423_v35  ;;  %v459_v53 = vadd.f32 %v455_v45, %v424_v36 }
  0x4f   : >> { %v460_v54 = vadd.f32 %v456_v46, %v425_v37  ;;  %v461_v55 = vadd.f32 %v457_v47, %v426_v40  ;;  %v467_v56 = vadd.f32 %v463_v48, %v432_v38  ;;  %v468_v57 = vadd.f32 %v464_v49, %v433_v41 }
  0x50   : >> { %v469_v58 = vadd.f32 %v465_v50, %v434_v42  ;;  %v470_v59 = vadd.f32 %v466_v51, %v435_v43  ;;  %v484_v63 = vrot.slane %v2024_v11, %v2011_v6  ;;  %v488_v0 = vrot.slane %v2033_v15, %v2011_v6 }
  0x51   : >> { %v511_v4 = vrot.slane %v2018_v9, %v2013_v7  ;;  %v515_v5 = vrot.slane %v2021_v10, %v2013_v7  ;;  %v519_v16 = vrot.slane %v2024_v11, %v2013_v7  ;;  %v523_v17 = vrot.slane %v2033_v15, %v2013_v7 }
  0x52   : >> { %v489_v18 = vmul.f32 %v1616_v60, %v476_v61  ;;  %v490_v19 = vmul.f32 %v1616_v60, %v480_v62  ;;  %v491_v20 = vmul.f32 %v1616_v60, %v484_v63  ;;  %v492_v21 = vmul.f32 %v1616_v60, %v488_v0 }
  0x53   : >> { %v498_v22 = vmul.f32 %v1617_v1, %v476_v61  ;;  %v499_v23 = vmul.f32 %v1617_v1, %v480_v62  ;;  %v500_v24 = vmul.f32 %v1617_v1, %v484_v63  ;;  %v501_v25 = vmul.f32 %v1617_v1, %v488_v0 }
  0x54   : >> { %v493_v27 = vadd.f32 %v489_v18, %v458_v52  ;;  %v494_v28 = vadd.f32 %v490_v19, %v459_v53  ;;  %v495_v29 = vadd.f32 %v491_v20, %v460_v54  ;;  %v496_v30 = vadd.f32 %v492_v21, %v461_v55  ;;  %v1620_v52 = vld [vmem:[%s2583_s2 + $0x40] sm:$0xff]  ;;  %v1622_v18 = vld [vmem:[%s2583_s2 + $0x50] sm:$0xff] }
  0x55   : >> { %v502_v32 = vadd.f32 %v498_v22, %v467_v56  ;;  %v503_v33 = vadd.f32 %v499_v23, %v468_v57  ;;  %v504_v34 = vadd.f32 %v500_v24, %v469_v58  ;;  %v505_v35 = vadd.f32 %v501_v25, %v470_v59  ;;  %v1621_v57 = vld [vmem:[%s2583_s2 + $0x48] sm:$0xff]  ;;  %v1623_v23 = vld [vmem:[%s2583_s2 + $0x58] sm:$0xff] }
  0x56   : >> { %v524_v36 = vmul.f32 %v1618_v26, %v511_v4  ;;  %v525_v37 = vmul.f32 %v1618_v26, %v515_v5  ;;  %v526_v38 = vmul.f32 %v1618_v26, %v519_v16  ;;  %v527_v39 = vmul.f32 %v1618_v26, %v523_v17 }
  0x57   : >> { %v533_v40 = vmul.f32 %v1619_v31, %v511_v4  ;;  %v534_v41 = vmul.f32 %v1619_v31, %v515_v5  ;;  %v535_v42 = vmul.f32 %v1619_v31, %v519_v16  ;;  %v536_v43 = vmul.f32 %v1619_v31, %v523_v17 }
  0x58   : >> { %v528_v44 = vadd.f32 %v524_v36, %v493_v27  ;;  %v529_v45 = vadd.f32 %v525_v37, %v494_v28  ;;  %v530_v46 = vadd.f32 %v526_v38, %v495_v29  ;;  %v531_v47 = vadd.f32 %v527_v39, %v496_v30 }
  0x59   : >> { %v537_v48 = vadd.f32 %v533_v40, %v502_v32  ;;  %v538_v49 = vadd.f32 %v534_v41, %v503_v33  ;;  %v539_v50 = vadd.f32 %v535_v42, %v504_v34  ;;  %v540_v51 = vadd.f32 %v536_v43, %v505_v35 }
  0x5a   : >> { %v546_v53 = vrot.slane %v2018_v9, %v2015_v8  ;;  %v550_v54 = vrot.slane %v2021_v10, %v2015_v8  ;;  %v554_v55 = vrot.slane %v2024_v11, %v2015_v8  ;;  %v558_v56 = vrot.slane %v2033_v15, %v2015_v8 }
  0x5b   : >> { %v581_v58 = vrot.slane %v2018_v9, %v2026_v12  ;;  %v585_v59 = vrot.slane %v2021_v10, %v2026_v12  ;;  %v589_v60 = vrot.slane %v2024_v11, %v2026_v12  ;;  %v593_v61 = vrot.slane %v2033_v15, %v2026_v12 }
  0x5c   : >> { %v559_v62 = vmul.f32 %v1620_v52, %v546_v53  ;;  %v560_v63 = vmul.f32 %v1620_v52, %v550_v54  ;;  %v561_v0 = vmul.f32 %v1620_v52, %v554_v55  ;;  %v562_v1 = vmul.f32 %v1620_v52, %v558_v56 }
  0x5d   : >> { %v568_v4 = vmul.f32 %v1621_v57, %v546_v53  ;;  %v569_v5 = vmul.f32 %v1621_v57, %v550_v54  ;;  %v570_v16 = vmul.f32 %v1621_v57, %v554_v55  ;;  %v571_v17 = vmul.f32 %v1621_v57, %v558_v56 }
  0x5e   : >> { %v563_v19 = vadd.f32 %v559_v62, %v528_v44  ;;  %v564_v20 = vadd.f32 %v560_v63, %v529_v45  ;;  %v565_v21 = vadd.f32 %v561_v0, %v530_v46  ;;  %v566_v22 = vadd.f32 %v562_v1, %v531_v47  ;;  %v1624_v44 = vld [vmem:[%s2583_s2 + $0x60] sm:$0xff]  ;;  %v1626_v62 = vld [vmem:[%s2583_s2 + $0x70] sm:$0xff] }
  0x5f   : >> { %v572_v24 = vadd.f32 %v568_v4, %v537_v48  ;;  %v573_v25 = vadd.f32 %v569_v5, %v538_v49  ;;  %v574_v26 = vadd.f32 %v570_v16, %v539_v50  ;;  %v575_v27 = vadd.f32 %v571_v17, %v540_v51  ;;  %v1625_v49 = vld [vmem:[%s2583_s2 + $0x68] sm:$0xff]  ;;  %v1627_v5 = vld [vmem:[%s2583_s2 + $0x78] sm:$0xff] }
  0x60   : >> { %v594_v28 = vmul.f32 %v1622_v18, %v581_v58  ;;  %v595_v29 = vmul.f32 %v1622_v18, %v585_v59  ;;  %v596_v30 = vmul.f32 %v1622_v18, %v589_v60  ;;  %v597_v31 = vmul.f32 %v1622_v18, %v593_v61 }
  0x61   : >> { %v603_v32 = vmul.f32 %v1623_v23, %v581_v58  ;;  %v604_v33 = vmul.f32 %v1623_v23, %v585_v59  ;;  %v605_v34 = vmul.f32 %v1623_v23, %v589_v60  ;;  %v606_v35 = vmul.f32 %v1623_v23, %v593_v61 }
  0x62   : >> { %v598_v36 = vadd.f32 %v594_v28, %v563_v19  ;;  %v599_v37 = vadd.f32 %v595_v29, %v564_v20  ;;  %v600_v38 = vadd.f32 %v596_v30, %v565_v21  ;;  %v601_v39 = vadd.f32 %v597_v31, %v566_v22  ;;  %v2153_v20 = vld [vmem:[%s2144_s10] sm:$0xff] }
  0x63   : >> { %v607_v40 = vadd.f32 %v603_v32, %v572_v24  ;;  %v608_v41 = vadd.f32 %v604_v33, %v573_v25  ;;  %v609_v42 = vadd.f32 %v605_v34, %v574_v26  ;;  %v610_v43 = vadd.f32 %v606_v35, %v575_v27  ;;  %v2156_v25 = vld [vmem:[%s2144_s10 + $0x40] sm:$0xff] }
  0x64   : >> { %v616_v45 = vrot.slane %v2018_v9, %v2028_v13  ;;  %v620_v46 = vrot.slane %v2021_v10, %v2028_v13  ;;  %v624_v47 = vrot.slane %v2024_v11, %v2028_v13  ;;  %v628_v48 = vrot.slane %v2033_v15, %v2028_v13  ;;  %v2159_v26 = vld [vmem:[%s2144_s10 + $0x80] sm:$0xff] }
  0x65   : >> { %v651_v50 = vrot.slane %v2018_v9, %v2030_v14  ;;  %v655_v51 = vrot.slane %v2021_v10, %v2030_v14  ;;  %v659_v52 = vrot.slane %v2024_v11, %v2030_v14  ;;  %v663_v53 = vrot.slane %v2033_v15, %v2030_v14  ;;  %v2162_v27 = vld [vmem:[%s2144_s10 + $0xc0] sm:$0xff] }
  0x66   : >> { %v629_v54 = vmul.f32 %v1624_v44, %v616_v45  ;;  %v630_v55 = vmul.f32 %v1624_v44, %v620_v46  ;;  %v631_v56 = vmul.f32 %v1624_v44, %v624_v47  ;;  %v632_v57 = vmul.f32 %v1624_v44, %v628_v48 }
  0x67   : >> { %v638_v58 = vmul.f32 %v1625_v49, %v616_v45  ;;  %v639_v59 = vmul.f32 %v1625_v49, %v620_v46  ;;  %v640_v60 = vmul.f32 %v1625_v49, %v624_v47  ;;  %v641_v61 = vmul.f32 %v1625_v49, %v628_v48  ;;  %v1629_v45 = vld [vmem:[%s2583_s2 + $0x88] sm:$0xff] }
  0x68   : >> { %v633_v63 = vadd.f32 %v629_v54, %v598_v36  ;;  %v634_v0 = vadd.f32 %v630_v55, %v599_v37  ;;  %v635_v1 = vadd.f32 %v631_v56, %v600_v38  ;;  %v636_v4 = vadd.f32 %v632_v57, %v601_v39  ;;  %v1630_v57 = vld [vmem:[%s2583_s2 + $0x90] sm:$0xff] }
  0x69   : >> { %v642_v16 = vadd.f32 %v638_v58, %v607_v40  ;;  %v643_v17 = vadd.f32 %v639_v59, %v608_v41  ;;  %v644_v18 = vadd.f32 %v640_v60, %v609_v42  ;;  %v645_v19 = vadd.f32 %v641_v61, %v610_v43  ;;  %v1628_v40 = vld [vmem:[%s2583_s2 + $0x80] sm:$0xff] }
  0x6a   : >> { %v664_v21 = vmul.f32 %v1626_v62, %v651_v50  ;;  %v665_v22 = vmul.f32 %v1626_v62, %v655_v51  ;;  %v666_v23 = vmul.f32 %v1626_v62, %v659_v52  ;;  %v667_v24 = vmul.f32 %v1626_v62, %v663_v53 }
  0x6b   : >> { %v673_v28 = vmul.f32 %v1627_v5, %v651_v50  ;;  %v674_v29 = vmul.f32 %v1627_v5, %v655_v51  ;;  %v675_v30 = vmul.f32 %v1627_v5, %v659_v52  ;;  %v676_v31 = vmul.f32 %v1627_v5, %v663_v53 }
  0x6c   : >> { %v668_v32 = vadd.f32 %v664_v21, %v633_v63  ;;  %v669_v33 = vadd.f32 %v665_v22, %v634_v0  ;;  %v670_v34 = vadd.f32 %v666_v23, %v635_v1  ;;  %v671_v35 = vadd.f32 %v667_v24, %v636_v4 }
  0x6d   : >> { %v677_v36 = vadd.f32 %v673_v28, %v642_v16  ;;  %v678_v37 = vadd.f32 %v674_v29, %v643_v17  ;;  %v679_v38 = vadd.f32 %v675_v30, %v644_v18  ;;  %v680_v39 = vadd.f32 %v676_v31, %v645_v19 }
  0x6e   : >> { %v686_v41 = vrot.slane %v2153_v20, %v1996_v2  ;;  %v690_v42 = vrot.slane %v2156_v25, %v1996_v2  ;;  %v694_v43 = vrot.slane %v2159_v26, %v1996_v2  ;;  %v698_v44 = vrot.slane %v2162_v27, %v1996_v2 }
  0x6f   : >> { %v721_v46 = vrot.slane %v2153_v20, %v1998_v3  ;;  %v725_v47 = vrot.slane %v2156_v25, %v1998_v3  ;;  %v729_v48 = vrot.slane %v2159_v26, %v1998_v3  ;;  %v733_v49 = vrot.slane %v2162_v27, %v1998_v3  ;;  %v1631_v3 = vld [vmem:[%s2583_s2 + $0x98] sm:$0xff] }
  0x70   : >> { %v699_v50 = vmul.f32 %v1628_v40, %v686_v41  ;;  %v700_v51 = vmul.f32 %v1628_v40, %v690_v42  ;;  %v701_v52 = vmul.f32 %v1628_v40, %v694_v43  ;;  %v702_v2 = vmul.f32 %v1628_v40, %v698_v44 }
  0x71   : >> { %v708_v53 = vmul.f32 %v1629_v45, %v686_v41  ;;  %v709_v54 = vmul.f32 %v1629_v45, %v690_v42  ;;  %v710_v55 = vmul.f32 %v1629_v45, %v694_v43  ;;  %v711_v56 = vmul.f32 %v1629_v45, %v698_v44 }
  0x72   : >> { %v703_v58 = vadd.f32 %v699_v50, %v668_v32  ;;  %v704_v59 = vadd.f32 %v700_v51, %v669_v33  ;;  %v705_v60 = vadd.f32 %v701_v52, %v670_v34  ;;  %v706_v61 = vadd.f32 %v702_v2, %v671_v35  ;;  %v1632_v34 = vld [vmem:[%s2583_s2 + $0xa0] sm:$0xff]  ;;  %v1634_v51 = vld [vmem:[%s2583_s2 + $0xb0] sm:$0xff] }
  0x73   : >> { %v712_v62 = vadd.f32 %v708_v53, %v677_v36  ;;  %v713_v63 = vadd.f32 %v709_v54, %v678_v37  ;;  %v714_v0 = vadd.f32 %v710_v55, %v679_v38  ;;  %v715_v1 = vadd.f32 %v711_v56, %v680_v39  ;;  %v1633_v39 = vld [vmem:[%s2583_s2 + $0xa8] sm:$0xff] }
  0x74   : >> { %v734_v4 = vmul.f32 %v1630_v57, %v721_v46  ;;  %v735_v5 = vmul.f32 %v1630_v57, %v725_v47  ;;  %v736_v16 = vmul.f32 %v1630_v57, %v729_v48  ;;  %v737_v17 = vmul.f32 %v1630_v57, %v733_v49 }
  0x75   : >> { %v743_v18 = vmul.f32 %v1631_v3, %v721_v46  ;;  %v744_v19 = vmul.f32 %v1631_v3, %v725_v47  ;;  %v745_v21 = vmul.f32 %v1631_v3, %v729_v48  ;;  %v746_v22 = vmul.f32 %v1631_v3, %v733_v49 }
  0x76   : >> { %v738_v23 = vadd.f32 %v734_v4, %v703_v58  ;;  %v739_v24 = vadd.f32 %v735_v5, %v704_v59  ;;  %v740_v28 = vadd.f32 %v736_v16, %v705_v60  ;;  %v741_v29 = vadd.f32 %v737_v17, %v706_v61 }
  0x77   : >> { %v747_v30 = vadd.f32 %v743_v18, %v712_v62  ;;  %v748_v31 = vadd.f32 %v744_v19, %v713_v63  ;;  %v749_v32 = vadd.f32 %v745_v21, %v714_v0  ;;  %v750_v33 = vadd.f32 %v746_v22, %v715_v1 }
  0x78   : >> { %v756_v35 = vrot.slane %v2153_v20, %v2011_v6  ;;  %v760_v36 = vrot.slane %v2156_v25, %v2011_v6  ;;  %v764_v37 = vrot.slane %v2159_v26, %v2011_v6  ;;  %v768_v38 = vrot.slane %v2162_v27, %v2011_v6 }
  0x79   : >> { %v791_v40 = vrot.slane %v2153_v20, %v2013_v7  ;;  %v795_v41 = vrot.slane %v2156_v25, %v2013_v7  ;;  %v799_v42 = vrot.slane %v2159_v26, %v2013_v7  ;;  %v803_v43 = vrot.slane %v2162_v27, %v2013_v7  ;;  %v1635_v7 = vld [vmem:[%s2583_s2 + $0xb8] sm:$0xff] }
  0x7a   : >> { %v769_v44 = vmul.f32 %v1632_v34, %v756_v35  ;;  %v770_v45 = vmul.f32 %v1632_v34, %v760_v36  ;;  %v771_v46 = vmul.f32 %v1632_v34, %v764_v37  ;;  %v772_v6 = vmul.f32 %v1632_v34, %v768_v38 }
  0x7b   : >> { %v778_v47 = vmul.f32 %v1633_v39, %v756_v35  ;;  %v779_v48 = vmul.f32 %v1633_v39, %v760_v36  ;;  %v780_v49 = vmul.f32 %v1633_v39, %v764_v37  ;;  %v781_v50 = vmul.f32 %v1633_v39, %v768_v38 }
  0x7c   : >> { %v773_v52 = vadd.f32 %v769_v44, %v738_v23  ;;  %v774_v2 = vadd.f32 %v770_v45, %v739_v24  ;;  %v775_v53 = vadd.f32 %v771_v46, %v740_v28  ;;  %v776_v54 = vadd.f32 %v772_v6, %v741_v29  ;;  %v1636_v23 = vld [vmem:[%s2583_s2 + $0xc0] sm:$0xff] }
  0x7d   : >> { %v782_v55 = vadd.f32 %v778_v47, %v747_v30  ;;  %v783_v56 = vadd.f32 %v779_v48, %v748_v31  ;;  %v784_v57 = vadd.f32 %v780_v49, %v749_v32  ;;  %v785_v58 = vadd.f32 %v781_v50, %v750_v33  ;;  %v1637_v31 = vld [vmem:[%s2583_s2 + $0xc8] sm:$0xff] }
  0x7e   : >> { %v804_v59 = vmul.f32 %v1634_v51, %v791_v40  ;;  %v805_v60 = vmul.f32 %v1634_v51, %v795_v41  ;;  %v806_v61 = vmul.f32 %v1634_v51, %v799_v42  ;;  %v807_v3 = vmul.f32 %v1634_v51, %v803_v43 }
  0x7f   : >> { %v813_v62 = vmul.f32 %v1635_v7, %v791_v40  ;;  %v814_v63 = vmul.f32 %v1635_v7, %v795_v41  ;;  %v815_v0 = vmul.f32 %v1635_v7, %v799_v42  ;;  %v816_v1 = vmul.f32 %v1635_v7, %v803_v43  ;;  %v1638_v43 = vld [vmem:[%s2583_s2 + $0xd0] sm:$0xff] }
  0x80   : >> { %v808_v4 = vadd.f32 %v804_v59, %v773_v52  ;;  %v809_v5 = vadd.f32 %v805_v60, %v774_v2  ;;  %v810_v16 = vadd.f32 %v806_v61, %v775_v53  ;;  %v811_v17 = vadd.f32 %v807_v3, %v776_v54 }
  0x81   : >> { %v817_v18 = vadd.f32 %v813_v62, %v782_v55  ;;  %v818_v19 = vadd.f32 %v814_v63, %v783_v56  ;;  %v819_v21 = vadd.f32 %v815_v0, %v784_v57  ;;  %v820_v22 = vadd.f32 %v816_v1, %v785_v58  ;;  %v1640_v63 = vld [vmem:[%s2583_s2 + $0xe0] sm:$0xff] }
  0x82   : >> { %v826_v24 = vrot.slane %v2153_v20, %v2015_v8  ;;  %v830_v28 = vrot.slane %v2156_v25, %v2015_v8  ;;  %v834_v29 = vrot.slane %v2159_v26, %v2015_v8  ;;  %v838_v30 = vrot.slane %v2162_v27, %v2015_v8 }
  0x83   : >> { %v861_v32 = vrot.slane %v2153_v20, %v2026_v12  ;;  %v865_v33 = vrot.slane %v2156_v25, %v2026_v12  ;;  %v869_v34 = vrot.slane %v2159_v26, %v2026_v12  ;;  %v873_v35 = vrot.slane %v2162_v27, %v2026_v12  ;;  %v1639_v12 = vld [vmem:[%s2583_s2 + $0xd8] sm:$0xff] }
  0x84   : >> { %v839_v36 = vmul.f32 %v1636_v23, %v826_v24  ;;  %v840_v37 = vmul.f32 %v1636_v23, %v830_v28  ;;  %v841_v38 = vmul.f32 %v1636_v23, %v834_v29  ;;  %v842_v8 = vmul.f32 %v1636_v23, %v838_v30 }
  0x85   : >> { %v848_v39 = vmul.f32 %v1637_v31, %v826_v24  ;;  %v849_v40 = vmul.f32 %v1637_v31, %v830_v28  ;;  %v850_v41 = vmul.f32 %v1637_v31, %v834_v29  ;;  %v851_v42 = vmul.f32 %v1637_v31, %v838_v30 }
  0x86   : >> { %v843_v44 = vadd.f32 %v839_v36, %v808_v4  ;;  %v844_v45 = vadd.f32 %v840_v37, %v809_v5  ;;  %v845_v46 = vadd.f32 %v841_v38, %v810_v16  ;;  %v846_v6 = vadd.f32 %v842_v8, %v811_v17  ;;  %v1641_v16 = vld [vmem:[%s2583_s2 + $0xe8] sm:$0xff] }
  0x87   : >> { %v852_v47 = vadd.f32 %v848_v39, %v817_v18  ;;  %v853_v48 = vadd.f32 %v849_v40, %v818_v19  ;;  %v854_v49 = vadd.f32 %v850_v41, %v819_v21  ;;  %v855_v50 = vadd.f32 %v851_v42, %v820_v22 }
  0x88   : >> { %v874_v51 = vmul.f32 %v1638_v43, %v861_v32  ;;  %v875_v52 = vmul.f32 %v1638_v43, %v865_v33  ;;  %v876_v2 = vmul.f32 %v1638_v43, %v869_v34  ;;  %v877_v53 = vmul.f32 %v1638_v43, %v873_v35 }
  0x89   : >> { %v883_v54 = vmul.f32 %v1639_v12, %v861_v32  ;;  %v884_v7 = vmul.f32 %v1639_v12, %v865_v33  ;;  %v885_v55 = vmul.f32 %v1639_v12, %v869_v34  ;;  %v886_v56 = vmul.f32 %v1639_v12, %v873_v35  ;;  %v1642_v32 = vld [vmem:[%s2583_s2 + $0xf0] sm:$0xff]  ;;  %v1643_v35 = vld [vmem:[%s2583_s2 + $0xf8] sm:$0xff] }
  0x8a   : >> { %v878_v57 = vadd.f32 %v874_v51, %v843_v44  ;;  %v879_v58 = vadd.f32 %v875_v52, %v844_v45  ;;  %v880_v59 = vadd.f32 %v876_v2, %v845_v46  ;;  %v881_v60 = vadd.f32 %v877_v53, %v846_v6 }
  0x8b   : >> { %v887_v61 = vadd.f32 %v883_v54, %v852_v47  ;;  %v888_v3 = vadd.f32 %v884_v7, %v853_v48  ;;  %v889_v62 = vadd.f32 %v885_v55, %v854_v49  ;;  %v896_v0 = vrot.slane %v2153_v20, %v2028_v13 }
  0x8c   : >> { %v900_v1 = vrot.slane %v2156_v25, %v2028_v13  ;;  %v904_v4 = vrot.slane %v2159_v26, %v2028_v13  ;;  %v908_v5 = vrot.slane %v2162_v27, %v2028_v13  ;;  %v890_v17 = vadd.f32 %v886_v56, %v855_v50 }
  0x8d   : >> { %v931_v18 = vrot.slane %v2153_v20, %v2030_v14  ;;  %v935_v19 = vrot.slane %v2156_v25, %v2030_v14  ;;  %v939_v21 = vrot.slane %v2159_v26, %v2030_v14  ;;  %v909_v22 = vmul.f32 %v1640_v63, %v896_v0 }
  0x8e   : >> { %v910_v23 = vmul.f32 %v1640_v63, %v900_v1  ;;  %v911_v24 = vmul.f32 %v1640_v63, %v904_v4  ;;  %v912_v28 = vmul.f32 %v1640_v63, %v908_v5  ;;  %v918_v29 = vmul.f32 %v1641_v16, %v896_v0 }
  0x8f   : >> { %v919_v13 = vmul.f32 %v1641_v16, %v900_v1  ;;  %v920_v30 = vmul.f32 %v1641_v16, %v904_v4  ;;  %v921_v31 = vmul.f32 %v1641_v16, %v908_v5  ;;  %v913_v33 = vadd.f32 %v909_v22, %v878_v57 }
  0x90   : >> { %v943_v34 = vrot.slane %v2162_v27, %v2030_v14  ;;  %v914_v36 = vadd.f32 %v910_v23, %v879_v58  ;;  %v915_v37 = vadd.f32 %v911_v24, %v880_v59  ;;  %v922_v38 = vadd.f32 %v918_v29, %v887_v61 }
  0x91   : >> { %v2276_v8 = vadd.f32 %v912_v28, %v881_v60  ;;  %v944_v39 = vmul.f32 %v1642_v32, %v931_v18  ;;  %v945_v40 = vmul.f32 %v1642_v32, %v935_v19  ;;  %v946_v41 = vmul.f32 %v1642_v32, %v939_v21 }
  0x92   : >> { %v923_v42 = vadd.f32 %v919_v13, %v888_v3  ;;  %v924_v43 = vadd.f32 %v920_v30, %v889_v62  ;;  %v925_v44 = vadd.f32 %v921_v31, %v890_v17  ;;  %v953_v45 = vmul.f32 %v1643_v35, %v931_v18 }
  0x93   : >> { %v947_v46 = vmul.f32 %v1642_v32, %v943_v34  ;;  %v948_v6 = vadd.f32 %v944_v39, %v913_v33  ;;  %v954_v12 = vmul.f32 %v1643_v35, %v935_v19  ;;  %v955_v14 = vmul.f32 %v1643_v35, %v939_v21 }
  0x94   : >> { %v2278_v47 = vadd.f32 %v945_v40, %v914_v36  ;;  %v2280_v48 = vadd.f32 %v946_v41, %v915_v37  ;;  %v956_v49 = vmul.f32 %v1643_v35, %v943_v34  ;;  %v957_v50 = vadd.f32 %v953_v45, %v922_v38 }
  0x95   : >> { %v961_v51 = vmul.f32 %v948_v6, %v2018_v9  ;;  %v962_v52 = vmul.f32 %v948_v6, %v2021_v10  ;;  %v963_v2 = vmul.f32 %v948_v6, %v2024_v11  ;;  %v964_v53 = vmul.f32 %v948_v6, %v2033_v15 }
  0x96   : >> { %v989_v54 = vmul.f32 %v957_v50, %v2153_v20  ;;  %v990_v7 = vmul.f32 %v957_v50, %v2156_v25  ;;  %v991_v55 = vmul.f32 %v957_v50, %v2159_v26  ;;  %v992_v56 = vmul.f32 %v957_v50, %v2162_v27 }
  0x97   : >> { %v965_v57 = vrot.slane %v961_v51, 4  ;;  %v971_v58 = vrot.slane %v962_v52, 4  ;;  %v977_v59 = vrot.slane %v963_v2, 4  ;;  %v983_v60 = vrot.slane %v964_v53, 4 }
  0x98   : >> { %v993_v61 = vrot.slane %v989_v54, 4  ;;  %v999_v3 = vrot.slane %v990_v7, 4  ;;  %v1005_v62 = vrot.slane %v991_v55, 4  ;;  %v1011_v63 = vrot.slane %v992_v56, 4 }
  0x99   : >> { %v966_v0 = vadd.f32 %v965_v57, %v961_v51  ;;  %v972_v1 = vadd.f32 %v971_v58, %v962_v52  ;;  %v978_v4 = vadd.f32 %v977_v59, %v963_v2  ;;  %v984_v5 = vadd.f32 %v983_v60, %v964_v53 }
  0x9a   : >> { %v994_v16 = vadd.f32 %v993_v61, %v989_v54  ;;  %v1000_v17 = vadd.f32 %v999_v3, %v990_v7  ;;  %v1006_v18 = vadd.f32 %v1005_v62, %v991_v55  ;;  %v1012_v19 = vadd.f32 %v1011_v63, %v992_v56 }
  0x9b   : >> { %v967_v21 = vrot.slane %v966_v0, 2  ;;  %v973_v22 = vrot.slane %v972_v1, 2  ;;  %v979_v23 = vrot.slane %v978_v4, 2  ;;  %v985_v24 = vrot.slane %v984_v5, 2 }
  0x9c   : >> { %v995_v28 = vrot.slane %v994_v16, 2  ;;  %v1001_v29 = vrot.slane %v1000_v17, 2  ;;  %v1007_v13 = vrot.slane %v1006_v18, 2  ;;  %v1013_v30 = vrot.slane %v1012_v19, 2 }
  0x9d   : >> { %v968_v31 = vadd.f32 %v967_v21, %v966_v0  ;;  %v974_v32 = vadd.f32 %v973_v22, %v972_v1  ;;  %v980_v33 = vadd.f32 %v979_v23, %v978_v4  ;;  %v986_v34 = vadd.f32 %v985_v24, %v984_v5 }
  0x9e   : >> { %v996_v35 = vadd.f32 %v995_v28, %v994_v16  ;;  %v1002_v36 = vadd.f32 %v1001_v29, %v1000_v17  ;;  %v1008_v37 = vadd.f32 %v1007_v13, %v1006_v18  ;;  %v1014_v38 = vadd.f32 %v1013_v30, %v1012_v19 }
  0x9f   : >> { %v969_v39 = vrot.slane %v968_v31, 1  ;;  %v975_v40 = vrot.slane %v974_v32, 1  ;;  %v981_v41 = vrot.slane %v980_v33, 1  ;;  %v987_v45 = vrot.slane %v986_v34, 1 }
  0xa0   : >> { %v997_v6 = vrot.slane %v996_v35, 1  ;;  %v1003_v50 = vrot.slane %v1002_v36, 1  ;;  %v1009_v51 = vrot.slane %v1008_v37, 1  ;;  %v1015_v52 = vrot.slane %v1014_v38, 1 }
  0xa1   : >> { %v2291_v2 = vadd.f32 %v947_v46, %v2276_v8  ;;  %v958_v53 = vadd.f32 %v954_v12, %v923_v42  ;;  %v2293_v54 = vadd.f32 %v955_v14, %v924_v43  ;;  %v2295_v7 = vadd.f32 %v956_v49, %v925_v44 }
  0xa2   : >> { %v970_v55 = vadd.f32 %v969_v39, %v968_v31  ;;  %v976_v56 = vadd.f32 %v975_v40, %v974_v32  ;;  %v982_v57 = vadd.f32 %v981_v41, %v980_v33  ;;  %v988_v58 = vadd.f32 %v987_v45, %v986_v34 }
  0xa3   : >> { %v1021_v59 = vmul.f32 %v2278_v47, %v2018_v9  ;;  %v1022_v60 = vmul.f32 %v2278_v47, %v2021_v10  ;;  %v1023_v61 = vmul.f32 %v2278_v47, %v2024_v11  ;;  %v1024_v8 = vmul.f32 %v2278_v47, %v2033_v15 }
  0xa4   : >> { %v998_v42 = vadd.f32 %v997_v6, %v996_v35  ;;  %v1004_v43 = vadd.f32 %v1003_v50, %v1002_v36  ;;  %v1010_v44 = vadd.f32 %v1009_v51, %v1008_v37  ;;  %v1016_v46 = vadd.f32 %v1015_v52, %v1014_v38 }
  0xa5   : >> { %v1025_v12 = vrot.slane %v1021_v59, 4  ;;  %v1031_v14 = vrot.slane %v1022_v60, 4  ;;  %v1037_v49 = vrot.slane %v1023_v61, 4  ;;  %v1043_v3 = vrot.slane %v1024_v8, 4 }
  0xa6   : >> { %v1049_v62 = vmul.f32 %v958_v53, %v2153_v20  ;;  %v1050_v63 = vmul.f32 %v958_v53, %v2156_v25  ;;  %v1051_v0 = vmul.f32 %v958_v53, %v2159_v26  ;;  %v1052_v1 = vmul.f32 %v958_v53, %v2162_v27 }
  0xa7   : >> { %v1026_v4 = vadd.f32 %v1025_v12, %v1021_v59  ;;  %v1032_v5 = vadd.f32 %v1031_v14, %v1022_v60  ;;  %v1038_v16 = vadd.f32 %v1037_v49, %v1023_v61  ;;  %v1044_v47 = vadd.f32 %v1043_v3, %v1024_v8 }
  0xa8   : >> { %v1053_v17 = vrot.slane %v1049_v62, 4  ;;  %v1059_v18 = vrot.slane %v1050_v63, 4  ;;  %v1065_v19 = vrot.slane %v1051_v0, 4  ;;  %v1071_v21 = vrot.slane %v1052_v1, 4 }
  0xa9   : >> { %v1027_v22 = vrot.slane %v1026_v4, 2  ;;  %v1033_v23 = vrot.slane %v1032_v5, 2  ;;  %v1039_v24 = vrot.slane %v1038_v16, 2  ;;  %v1045_v28 = vrot.slane %v1044_v47, 2 }
  0xaa   : >> { %v1054_v29 = vadd.f32 %v1053_v17, %v1049_v62  ;;  %v1060_v13 = vadd.f32 %v1059_v18, %v1050_v63  ;;  %v1066_v30 = vadd.f32 %v1065_v19, %v1051_v0  ;;  %v1072_v31 = vadd.f32 %v1071_v21, %v1052_v1 }
  0xab   : >> { %v1028_v32 = vadd.f32 %v1027_v22, %v1026_v4  ;;  %v1034_v33 = vadd.f32 %v1033_v23, %v1032_v5  ;;  %v1040_v34 = vadd.f32 %v1039_v24, %v1038_v16  ;;  %v1046_v35 = vadd.f32 %v1045_v28, %v1044_v47 }
  0xac   : >> { %v1055_v36 = vrot.slane %v1054_v29, 2  ;;  %v1061_v37 = vrot.slane %v1060_v13, 2  ;;  %v1067_v38 = vrot.slane %v1066_v30, 2  ;;  %v1073_v39 = vrot.slane %v1072_v31, 2 }
  0xad   : >> { %v1029_v40 = vrot.slane %v1028_v32, 1  ;;  %v1035_v41 = vrot.slane %v1034_v33, 1  ;;  %v1041_v45 = vrot.slane %v1040_v34, 1  ;;  %v1047_v6 = vrot.slane %v1046_v35, 1 }
  0xae   : >> { %v1056_v50 = vadd.f32 %v1055_v36, %v1054_v29  ;;  %v1062_v51 = vadd.f32 %v1061_v37, %v1060_v13  ;;  %v1068_v52 = vadd.f32 %v1067_v38, %v1066_v30  ;;  %v1074_v53 = vadd.f32 %v1073_v39, %v1072_v31 }
  0xaf   : >> { %v2309_v59 = vadd.f32 %v998_v42, %v970_v55  ;;  %v2311_v60 = vadd.f32 %v1004_v43, %v976_v56  ;;  %v2313_v61 = vadd.f32 %v1010_v44, %v982_v57  ;;  %v2315_v8 = vadd.f32 %v1016_v46, %v988_v58 }
  0xb0   : >> { %v1057_v12 = vrot.slane %v1056_v50, 1  ;;  %v1063_v14 = vrot.slane %v1062_v51, 1  ;;  %v1069_v49 = vrot.slane %v1068_v52, 1  ;;  %v1075_v3 = vrot.slane %v1074_v53, 1 }
  0xb1   : >> { %v1081_v62 = vmul.f32 %v2280_v48, %v2018_v9  ;;  %v1082_v63 = vmul.f32 %v2280_v48, %v2021_v10  ;;  %v1083_v55 = vmul.f32 %v2280_v48, %v2024_v11  ;;  %v1084_v56 = vmul.f32 %v2280_v48, %v2033_v15 }
  0xb2   : >> { %v1030_v57 = vadd.f32 %v1029_v40, %v1028_v32  ;;  %v1036_v42 = vadd.f32 %v1035_v41, %v1034_v33  ;;  %v1042_v58 = vadd.f32 %v1041_v45, %v1040_v34  ;;  %v1048_v43 = vadd.f32 %v1047_v6, %v1046_v35 }
  0xb3   : >> { %v1085_v44 = vrot.slane %v1081_v62, 4  ;;  %v1091_v46 = vrot.slane %v1082_v63, 4  ;;  %v1097_v0 = vrot.slane %v1083_v55, 4  ;;  %v1103_v1 = vrot.slane %v1084_v56, 4 }
  0xb4   : >> { %v1058_v4 = vadd.f32 %v1057_v12, %v1056_v50  ;;  %v1064_v5 = vadd.f32 %v1063_v14, %v1062_v51  ;;  %v1070_v9 = vadd.f32 %v1069_v49, %v1068_v52  ;;  %v1076_v16 = vadd.f32 %v1075_v3, %v1074_v53 }
  0xb5   : >> { %v1086_v47 = vadd.f32 %v1085_v44, %v1081_v62  ;;  %v1092_v10 = vadd.f32 %v1091_v46, %v1082_v63  ;;  %v1098_v17 = vadd.f32 %v1097_v0, %v1083_v55  ;;  %v1104_v18 = vadd.f32 %v1103_v1, %v1084_v56  ;;  %v2342_v55 = vld [vmem:[%s2003_s29] sm:$0xff] }
  0xb6   : >> { %v1109_v11 = vmul.f32 %v2293_v54, %v2153_v20  ;;  %v1110_v15 = vmul.f32 %v2293_v54, %v2156_v25  ;;  %v1111_v48 = vmul.f32 %v2293_v54, %v2159_v26  ;;  %v1112_v19 = vmul.f32 %v2293_v54, %v2162_v27  ;;  %v2357_v44 = vld [vmem:[%s2003_s29 + $0xc0] sm:$0xff] }
  0xb7   : >> { %v1087_v21 = vrot.slane %v1086_v47, 2  ;;  %v1093_v22 = vrot.slane %v1092_v10, 2  ;;  %v1099_v23 = vrot.slane %v1098_v17, 2  ;;  %v1105_v24 = vrot.slane %v1104_v18, 2 }
  0xb8   : >> { %v1113_v28 = vrot.slane %v1109_v11, 4  ;;  %v1119_v29 = vrot.slane %v1110_v15, 4  ;;  %v1125_v13 = vrot.slane %v1111_v48, 4  ;;  %v1131_v30 = vrot.slane %v1112_v19, 4 }
  0xb9   : >> { %v1088_v31 = vadd.f32 %v1087_v21, %v1086_v47  ;;  %v1094_v32 = vadd.f32 %v1093_v22, %v1092_v10  ;;  %v1100_v33 = vadd.f32 %v1099_v23, %v1098_v17  ;;  %v1106_v34 = vadd.f32 %v1105_v24, %v1104_v18 }
  0xba   : >> { %v1114_v35 = vadd.f32 %v1113_v28, %v1109_v11  ;;  %v1120_v36 = vadd.f32 %v1119_v29, %v1110_v15  ;;  %v1126_v37 = vadd.f32 %v1125_v13, %v1111_v48  ;;  %v1132_v38 = vadd.f32 %v1131_v30, %v1112_v19 }
  0xbb   : >> { %v2333_v39 = vadd.f32 %v1058_v4, %v1030_v57  ;;  %v2335_v54 = vadd.f32 %v1064_v5, %v1036_v42  ;;  %v2337_v40 = vadd.f32 %v1070_v9, %v1042_v58  ;;  %v2339_v41 = vadd.f32 %v1076_v16, %v1048_v43  ;;  %v2347_v57 = vld [vmem:[%s2003_s29 + $0x40] sm:$0xff] }
  0xbc   : >> { %v1115_v45 = vrot.slane %v1114_v35, 2  ;;  %v1121_v6 = vrot.slane %v1120_v36, 2  ;;  %v1127_v50 = vrot.slane %v1126_v37, 2  ;;  %v1133_v51 = vrot.slane %v1132_v38, 2  ;;  %v2352_v58 = vld [vmem:[%s2003_s29 + $0x80] sm:$0xff]  ;;  %s1350_s29 = scalar_lea.vmem %s1986_s25, %s1994_s28 [#allocation4] }
  0xbd   : >> { %v1089_v52 = vrot.slane %v1088_v31, 1  ;;  %v1095_v53 = vrot.slane %v1094_v32, 1  ;;  %v1101_v12 = vrot.slane %v1100_v33, 1  ;;  %v1107_v14 = vrot.slane %v1106_v34, 1 }
  0xbe   : >> { %v1116_v49 = vadd.f32 %v1115_v45, %v1114_v35  ;;  %v1122_v3 = vadd.f32 %v1121_v6, %v1120_v36  ;;  %v1128_v62 = vadd.f32 %v1127_v50, %v1126_v37  ;;  %v1134_v63 = vadd.f32 %v1133_v51, %v1132_v38 }
  0xbf   : >> { %v1141_v56 = vmul.f32 %v2342_v55, %v2291_v2  ;;  %v1142_v42 = vmul.f32 %v2347_v57, %v2291_v2  ;;  %v1143_v43 = vmul.f32 %v2352_v58, %v2291_v2  ;;  %v1144_v46 = vmul.f32 %v2357_v44, %v2291_v2 }
  0xc0   : >> { %v1117_v0 = vrot.slane %v1116_v49, 1  ;;  %v1123_v1 = vrot.slane %v1122_v3, 1  ;;  %v1129_v4 = vrot.slane %v1128_v62, 1  ;;  %v1135_v5 = vrot.slane %v1134_v63, 1 }
  0xc1   : >> { %v1145_v9 = vrot.slane %v1141_v56, 4  ;;  %v1151_v16 = vrot.slane %v1142_v42, 4  ;;  %v1157_v47 = vrot.slane %v1143_v43, 4  ;;  %v1163_v10 = vrot.slane %v1144_v46, 4 }
  0xc2   : >> { %v1090_v17 = vadd.f32 %v1089_v52, %v1088_v31  ;;  %v1096_v18 = vadd.f32 %v1095_v53, %v1094_v32  ;;  %v1102_v11 = vadd.f32 %v1101_v12, %v1100_v33  ;;  %v1108_v15 = vadd.f32 %v1107_v14, %v1106_v34 }
  0xc3   : >> { %v1146_v48 = vadd.f32 %v1145_v9, %v1141_v56  ;;  %v1152_v19 = vadd.f32 %v1151_v16, %v1142_v42  ;;  %v1158_v21 = vadd.f32 %v1157_v47, %v1143_v43  ;;  %v1164_v22 = vadd.f32 %v1163_v10, %v1144_v46 }
  0xc4   : >> { %v1118_v23 = vadd.f32 %v1117_v0, %v1116_v49  ;;  %v1124_v24 = vadd.f32 %v1123_v1, %v1122_v3  ;;  %v1130_v28 = vadd.f32 %v1129_v4, %v1128_v62  ;;  %v1136_v2 = vadd.f32 %v1135_v5, %v1134_v63 }
  0xc5   : >> { %v1147_v29 = vrot.slane %v1146_v48, 2  ;;  %v1153_v13 = vrot.slane %v1152_v19, 2  ;;  %v1159_v30 = vrot.slane %v1158_v21, 2  ;;  %v1165_v35 = vrot.slane %v1164_v22, 2 }
  0xc6   : >> { %v1169_v36 = vmul.f32 %v2295_v7, %v2153_v20  ;;  %v1170_v31 = vmul.f32 %v2295_v7, %v2156_v25  ;;  %v1171_v32 = vmul.f32 %v2295_v7, %v2159_v26  ;;  %v1172_v33 = vmul.f32 %v2295_v7, %v2162_v27 }
  0xc7   : >> { %v1148_v34 = vadd.f32 %v1147_v29, %v1146_v48  ;;  %v1154_v37 = vadd.f32 %v1153_v13, %v1152_v19  ;;  %v1160_v38 = vadd.f32 %v1159_v30, %v1158_v21  ;;  %v1166_v45 = vadd.f32 %v1165_v35, %v1164_v22 }
  0xc8   : >> { %v1173_v6 = vrot.slane %v1169_v36, 4  ;;  %v1179_v50 = vrot.slane %v1170_v31, 4  ;;  %v1185_v51 = vrot.slane %v1171_v32, 4  ;;  %v1191_v52 = vrot.slane %v1172_v33, 4 }
  0xc9   : >> { %v2369_v53 = vadd.f32 %v1118_v23, %v1090_v17  ;;  %v2371_v20 = vadd.f32 %v1124_v24, %v1096_v18  ;;  %v2373_v12 = vadd.f32 %v1130_v28, %v1102_v11  ;;  %v2375_v25 = vadd.f32 %v1136_v2, %v1108_v15 }
  0xca   : >> { %v1174_v26 = vadd.f32 %v1173_v6, %v1169_v36  ;;  %v1180_v14 = vadd.f32 %v1179_v50, %v1170_v31  ;;  %v1186_v49 = vadd.f32 %v1185_v51, %v1171_v32  ;;  %v1192_v27 = vadd.f32 %v1191_v52, %v1172_v33 }
  0xcb   : >> { %v1149_v7 = vrot.slane %v1148_v34, 1  ;;  %v1155_v3 = vrot.slane %v1154_v37, 1  ;;  %v1161_v62 = vrot.slane %v1160_v38, 1  ;;  %v1167_v63 = vrot.slane %v1166_v45, 1 }
  0xcc   : >> { %v1175_v56 = vrot.slane %v1174_v26, 2  ;;  %v1181_v42 = vrot.slane %v1180_v14, 2  ;;  %v1187_v43 = vrot.slane %v1186_v49, 2  ;;  %v1193_v46 = vrot.slane %v1192_v27, 2 }
  0xcd   : >> { %v1201_v0 = vmax.f32 %v2309_v59, %v2333_v39  ;;  %v1202_v1 = vmax.f32 %v2311_v60, %v2335_v54  ;;  %v1203_v4 = vmax.f32 %v2313_v61, %v2337_v40  ;;  %v1204_v5 = vmax.f32 %v2315_v8, %v2339_v41 }
  0xce   : >> { %v1176_v9 = vadd.f32 %v1175_v56, %v1174_v26  ;;  %v1182_v16 = vadd.f32 %v1181_v42, %v1180_v14  ;;  %v1188_v47 = vadd.f32 %v1187_v43, %v1186_v49  ;;  %v1194_v10 = vadd.f32 %v1193_v46, %v1192_v27 }
  0xcf   : >> { %v1150_v17 = vadd.f32 %v1149_v7, %v1148_v34  ;;  %v1156_v18 = vadd.f32 %v1155_v3, %v1154_v37  ;;  %v1162_v11 = vadd.f32 %v1161_v62, %v1160_v38  ;;  %v1168_v15 = vadd.f32 %v1167_v63, %v1166_v45 }
  0xd0   : >> { %v1177_v48 = vrot.slane %v1176_v9, 1  ;;  %v1183_v19 = vrot.slane %v1182_v16, 1  ;;  %v1189_v21 = vrot.slane %v1188_v47, 1  ;;  %v1195_v22 = vrot.slane %v1194_v10, 1 }
  0xd1   : >> { %v1205_v23 = vmax.f32 %v1201_v0, %v2369_v53  ;;  %v1206_v24 = vmax.f32 %v1202_v1, %v2371_v20  ;;  %v1207_v28 = vmax.f32 %v1203_v4, %v2373_v12  ;;  %v1208_v2 = vmax.f32 %v1204_v5, %v2375_v25 }
  0xd2   : >> { %v1178_v29 = vadd.f32 %v1177_v48, %v1176_v9  ;;  %v1184_v13 = vadd.f32 %v1183_v19, %v1182_v16  ;;  %v1190_v30 = vadd.f32 %v1189_v21, %v1188_v47  ;;  %v1196_v35 = vadd.f32 %v1195_v22, %v1194_v10 }
  0xd4   : >> { %v1197_v36 = vadd.f32 %v1178_v29, %v1150_v17  ;;  %v1198_v31 = vadd.f32 %v1184_v13, %v1156_v18  ;;  %v1199_v32 = vadd.f32 %v1190_v30, %v1162_v11  ;;  %v1200_v33 = vadd.f32 %v1196_v35, %v1168_v15 }
  0xd6   : >> { %v1209_v34 = vmax.f32 %v1205_v23, %v1197_v36  ;;  %v1210_v37 = vmax.f32 %v1206_v24, %v1198_v31  ;;  %v1211_v38 = vmax.f32 %v1207_v28, %v1199_v32  ;;  %v1212_v45 = vmax.f32 %v1208_v2, %v1200_v33 }
  0xd8   : >> { %v1213_v6 = vsub.f32 %v2309_v59, %v1209_v34  ;;  %v1214_v50 = vsub.f32 %v2311_v60, %v1210_v37  ;;  %v1215_v51 = vsub.f32 %v2313_v61, %v1211_v38  ;;  %v1216_v52 = vsub.f32 %v2315_v8, %v1212_v45 }
  0xd9   : >> { %v1225_v26 = vsub.f32 %v2333_v39, %v1209_v34  ;;  %v1226_v14 = vsub.f32 %v2335_v54, %v1210_v37  ;;  %v1227_v3 = vsub.f32 %v2337_v40, %v1211_v38  ;;  %v1228_v63 = vsub.f32 %v2339_v41, %v1212_v45 }
  0xda   : >> { %v1217_v49 = vmul.f32 1.442695, %v1213_v6  ;;  %v1219_v27 = vmul.f32 1.442695, %v1214_v50  ;;  %v1221_v7 = vmul.f32 1.442695, %v1215_v51  ;;  %v1237_v60 = vsub.f32 %v2369_v53, %v1209_v34 }
  0xdb   : >> { %v1223_v62 = vmul.f32 1.442695, %v1216_v52  ;;  %v1229_v59 = vmul.f32 1.442695, %v1225_v26  ;;  %v1231_v61 = vmul.f32 1.442695, %v1226_v14  ;;  %v1238_v8 = vsub.f32 %v2371_v20, %v1210_v37 }
  0xdc   : >> { %1685 = vpow2.f32 %v1217_v49  ;;  %v1233_v39 = vmul.f32 1.442695, %v1227_v3  ;;  %v1239_v54 = vsub.f32 %v2373_v12, %v1211_v38  ;;  %v1235_v56 = vmul.f32 1.442695, %v1228_v63 }
  0xdd   : >> { %1687 = vpow2.f32 %v1219_v27  ;;  %v1240_v42 = vsub.f32 %v2375_v25, %v1212_v45  ;;  %v1241_v40 = vmul.f32 1.442695, %v1237_v60  ;;  %v1249_v43 = vsub.f32 %v1197_v36, %v1209_v34 }
  0xde   : >> { %1689 = vpow2.f32 %v1221_v7  ;;  %v1243_v41 = vmul.f32 1.442695, %v1238_v8  ;;  %v1250_v46 = vsub.f32 %v1198_v31, %v1210_v37  ;;  %v1245_v53 = vmul.f32 1.442695, %v1239_v54 }
  0xdf   : >> { %1691 = vpow2.f32 %v1223_v62  ;;  %v1251_v0 = vsub.f32 %v1199_v32, %v1211_v38  ;;  %v1247_v1 = vmul.f32 1.442695, %v1240_v42  ;;  %v1252_v20 = vsub.f32 %v1200_v33, %v1212_v45 }
  0xe0   : >> { %1693 = vpow2.f32 %v1229_v59  ;;  %v1253_v4 = vmul.f32 1.442695, %v1249_v43  ;;  %v1255_v12 = vmul.f32 1.442695, %v1250_v46 }
  0xe1   : >> { %1695 = vpow2.f32 %v1231_v61  ;;  %v1257_v5 = vmul.f32 1.442695, %v1251_v0  ;;  %v1259_v25 = vmul.f32 1.442695, %v1252_v20  ;;  %v1729_v61 = vld [vmem:[%s2144_s10] sm:$0xff] }
  0xe2   : >> { %1697 = vpow2.f32 %v1233_v39 }
  0xe3   : >> { %1699 = vpow2.f32 %v1235_v56 }
  0xe4   : >> { %1701 = vpow2.f32 %v1241_v40 }
  0xe5   : >> { %1703 = vpow2.f32 %v1243_v41 }
  0xe6   : >> { %1705 = vpow2.f32 %v1245_v53 }
  0xe7   : >> { %1707 = vpow2.f32 %v1247_v1 }
  0xe8   : >> { %1709 = vpow2.f32 %v1253_v4 }
  0xe9   : >> { %v1686_v9 = vpop.eup %1685  ;;  %1711 = vpow2.f32 %v1255_v12 }
  0xea   : >> { %v1688_v16 = vpop.eup %1687  ;;  %1713 = vpow2.f32 %v1257_v5 }
  0xeb   : >> { %v1690_v47 = vpop.eup %1689  ;;  %1715 = vpow2.f32 %v1259_v25  ;;  %v1730_v25 = vld [vmem:[%s2144_s10 + $0x40] sm:$0xff] }
  0xec   : >> { %v1692_v10 = vpop.eup %1691 }
  0xed   : >> { %v1694_v17 = vpop.eup %1693 }
  0xee   : >> { %v1696_v18 = vpop.eup %1695  ;;  %v1261_v11 = vadd.f32 %v1694_v17, %v1686_v9 }
  0xef   : >> { %v1698_v15 = vpop.eup %1697  ;;  %v1262_v48 = vadd.f32 %v1696_v18, %v1688_v16 }
  0xf0   : >> { %v1700_v19 = vpop.eup %1699  ;;  %v1263_v21 = vadd.f32 %v1698_v15, %v1690_v47 }
  0xf1   : >> { %v1702_v22 = vpop.eup %1701  ;;  %v1264_v23 = vadd.f32 %v1700_v19, %v1692_v10 }
  0xf2   : >> { %v1704_v24 = vpop.eup %1703  ;;  %v1265_v28 = vadd.f32 %v1702_v22, %v1261_v11 }
  0xf3   : >> { %v1706_v2 = vpop.eup %1705  ;;  %v1266_v29 = vadd.f32 %v1704_v24, %v1262_v48 }
  0xf4   : >> { %v1708_v13 = vpop.eup %1707  ;;  %v1267_v30 = vadd.f32 %v1706_v2, %v1263_v21 }
  0xf5   : >> { %v1710_v35 = vpop.eup %1709  ;;  %v1268_v36 = vadd.f32 %v1708_v13, %v1264_v23 }
  0xf6   : >> { %v1712_v31 = vpop.eup %1711  ;;  %v1269_v32 = vadd.f32 %v1710_v35, %v1265_v28  ;;  %v1731_v28 = vld [vmem:[%s2144_s10 + $0x80] sm:$0xff] }
  0xf7   : >> { %v2401_v33 = vpop.eup %1713  ;;  %v1270_v34 = vadd.f32 %v1712_v31, %v1266_v29 }
  0xf8   : >> { %v2403_v37 = vpop.eup %1715  ;;  %v1271_v38 = vadd.f32 %v2401_v33, %v1267_v30  ;;  %1717 = vrcp.f32 %v1269_v32 }
  0xf9   : >> { %v1272_v45 = vadd.f32 %v2403_v37, %v1268_v36  ;;  %1719 = vrcp.f32 %v1270_v34 }
  0xfa   : >> { %1721 = vrcp.f32 %v1271_v38 }
  0xfb   : >> { %1723 = vrcp.f32 %v1272_v45 }
 0x105   : >> { %v1718_v6 = vpop.eup %1717 }
 0x106   : >> { %v1720_v50 = vpop.eup %1719  ;;  %v1277_v51 = vmul.f32 %v1718_v6, %v1686_v9  ;;  %v1289_v52 = vmul.f32 %v1718_v6, %v1694_v17  ;;  %v1309_v26 = vmul.f32 %v1718_v6, %v1702_v22  ;;  %v1329_v14 = vmul.f32 %v1718_v6, %v1710_v35 }
 0x107   : >> { %v1722_v49 = vpop.eup %1721  ;;  %v1278_v27 = vmul.f32 %v1720_v50, %v1688_v16  ;;  %v1290_v7 = vmul.f32 %v1720_v50, %v1696_v18  ;;  %v1310_v3 = vmul.f32 %v1720_v50, %v1704_v24  ;;  %v1330_v62 = vmul.f32 %v1720_v50, %v1712_v31 }
 0x108   : >> { %v1724_v63 = vpop.eup %1723  ;;  %v1279_v59 = vmul.f32 %v1722_v49, %v1690_v47  ;;  %v1281_v60 = vmul.f32 %v2342_v55, %v1277_v51  ;;  %v1285_v8 = vmul.f32 %v1729_v61, %v1277_v51  ;;  %v1291_v39 = vmul.f32 %v1722_v49, %v1698_v15 }
 0x109   : >> { %v1280_v54 = vmul.f32 %v1724_v63, %v1692_v10  ;;  %v1282_v56 = vmul.f32 %v2342_v55, %v1278_v27  ;;  %v1286_v42 = vmul.f32 %v1729_v61, %v1278_v27  ;;  %v1292_v40 = vmul.f32 %v1724_v63, %v1700_v19 }
 0x10a   : >> { %v1283_v43 = vmul.f32 %v2342_v55, %v1279_v59  ;;  %v1287_v41 = vmul.f32 %v1729_v61, %v1279_v59  ;;  %v1293_v46 = vmul.f32 %v2347_v57, %v1289_v52  ;;  %v1294_v53 = vmul.f32 %v2347_v57, %v1290_v7 }
 0x10b   : >> { %v1284_v0 = vmul.f32 %v2342_v55, %v1280_v54  ;;  %v1288_v1 = vmul.f32 %v1729_v61, %v1280_v54  ;;  %v1295_v20 = vmul.f32 %v2347_v57, %v1291_v39  ;;  %v1296_v4 = vmul.f32 %v2347_v57, %v1292_v40 }
 0x10c   : >> { %v1297_v12 = vadd.f32 %v1293_v46, %v1281_v60  ;;  %v1298_v5 = vadd.f32 %v1294_v53, %v1282_v56  ;;  %v1301_v9 = vmul.f32 %v1730_v25, %v1289_v52  ;;  %v1302_v16 = vmul.f32 %v1730_v25, %v1290_v7 }
 0x10d   : >> { %v1299_v47 = vadd.f32 %v1295_v20, %v1283_v43  ;;  %v1300_v10 = vadd.f32 %v1296_v4, %v1284_v0  ;;  %v1303_v17 = vmul.f32 %v1730_v25, %v1291_v39  ;;  %v1304_v18 = vmul.f32 %v1730_v25, %v1292_v40 }
 0x10e   : >> { %v1305_v11 = vadd.f32 %v1301_v9, %v1285_v8  ;;  %v1306_v15 = vadd.f32 %v1302_v16, %v1286_v42  ;;  %v1311_v48 = vmul.f32 %v1722_v49, %v1706_v2  ;;  %v1312_v19 = vmul.f32 %v1724_v63, %v1708_v13 }
 0x10f   : >> { %v1307_v55 = vadd.f32 %v1303_v17, %v1287_v41  ;;  %v1308_v21 = vadd.f32 %v1304_v18, %v1288_v1  ;;  %v1313_v22 = vmul.f32 %v2352_v58, %v1309_v26  ;;  %v1314_v57 = vmul.f32 %v2352_v58, %v1310_v3 }
 0x110   : >> { %v1315_v23 = vmul.f32 %v2352_v58, %v1311_v48  ;;  %v1316_v24 = vmul.f32 %v2352_v58, %v1312_v19  ;;  %v1321_v29 = vmul.f32 %v1731_v28, %v1309_v26  ;;  %v1322_v30 = vmul.f32 %v1731_v28, %v1310_v3  ;;  %v1732_v26 = vld [vmem:[%s2144_s10 + $0xc0] sm:$0xff] }
 0x111   : >> { %v1317_v35 = vadd.f32 %v1313_v22, %v1297_v12  ;;  %v1318_v36 = vadd.f32 %v1314_v57, %v1298_v5  ;;  %v1323_v31 = vmul.f32 %v1731_v28, %v1311_v48  ;;  %v1324_v32 = vmul.f32 %v1731_v28, %v1312_v19 }
 0x112   : >> { %v1319_v2 = vadd.f32 %v1315_v23, %v1299_v47  ;;  %v1320_v13 = vadd.f32 %v1316_v24, %v1300_v10  ;;  %v1325_v34 = vadd.f32 %v1321_v29, %v1305_v11  ;;  %v1326_v38 = vadd.f32 %v1322_v30, %v1306_v15 }
 0x113   : >> { %v1327_v45 = vadd.f32 %v1323_v31, %v1307_v55  ;;  %v1328_v6 = vadd.f32 %v1324_v32, %v1308_v21  ;;  %v1331_v50 = vmul.f32 %v1722_v49, %v2401_v33  ;;  %v1332_v58 = vmul.f32 %v1724_v63, %v2403_v37 }
 0x114   : >> { %v1333_v51 = vmul.f32 %v2357_v44, %v1329_v14  ;;  %v1334_v52 = vmul.f32 %v2357_v44, %v1330_v62  ;;  %v1341_v27 = vmul.f32 %v1732_v26, %v1329_v14  ;;  %v1342_v7 = vmul.f32 %v1732_v26, %v1330_v62 }
 0x115   : >> { %v1335_v3 = vmul.f32 %v2357_v44, %v1331_v50  ;;  %v1336_v59 = vmul.f32 %v2357_v44, %v1332_v58  ;;  %v1343_v60 = vmul.f32 %v1732_v26, %v1331_v50  ;;  %v1344_v61 = vmul.f32 %v1732_v26, %v1332_v58 }
 0x116   : >> { %v1337_v8 = vadd.f32 %v1333_v51, %v1317_v35  ;;  %v1338_v39 = vadd.f32 %v1334_v52, %v1318_v36  ;;  %v1345_v54 = vadd.f32 %v1341_v27, %v1325_v34  ;;  %v1346_v33 = vadd.f32 %v1342_v7, %v1326_v38 }
 0x117   : >> { %v1339_v49 = vadd.f32 %v1335_v3, %v1319_v2  ;;  %v1340_v37 = vadd.f32 %v1336_v59, %v1320_v13  ;;  %v1347_v63 = vadd.f32 %v1343_v60, %v1327_v45  ;;  %v1348_v56 = vadd.f32 %v1344_v61, %v1328_v6  ;;  %383 = sbr.rel (!%p381_p10) target bundleno = 64 (0x40), region = 173 }
 0x118   : >> { %1351 = vst [vmem:[%s1350_s29] sm:$0xff] %v1337_v8  ;;  %1352 = vst [vmem:[%s1350_s29 + $0x80] sm:$0xff] %v1338_v39 }
 0x119   : >> { %1355 = vst [vmem:[%s1350_s29 + $0x40] sm:$0xff] %v1345_v54  ;;  %1356 = vst [vmem:[%s1350_s29 + $0xc0] sm:$0xff] %v1346_v33 }
 0x11a   : >> { %1353 = vst [vmem:[%s1350_s29 + $0x100] sm:$0xff] %v1339_v49  ;;  %1354 = vst [vmem:[%s1350_s29 + $0x180] sm:$0xff] %v1340_v37 }
 0x11b   : >> { %1357 = vst [vmem:[%s1350_s29 + $0x140] sm:$0xff] %v1347_v63  ;;  %1358 = vst [vmem:[%s1350_s29 + $0x1c0] sm:$0xff] %v1348_v56 }
 0x11c   : > { %1365 = sbr.rel (!%p1824_p5) target bundleno = 324 (0x144), region = 93  ;;  %s1652_s28 = sshll.u32 (%p1824_p5), %s1597_s18, 6 }
 0x11d   : > { %s2444_s24 = scalar_lea.vmem (%p1824_p5), %s2585_s4, %s1652_s28 }
 0x122   : > { %v1381_v44 = vld [vmem:[%s1986_s25] sm:$0xff]  ;;  %v1383_v14 = vld [vmem:[%s1986_s25 + $0x8] sm:$0xff]  ;;  %v1385_v62 = vld [vmem:[%s1986_s25 + $0x10] sm:$0xff] }
 0x123   : > { %v1387_v42 = vld [vmem:[%s1986_s25 + $0x18] sm:$0xff]  ;;  %v1389_v40 = vld [vmem:[%s1986_s25 + $0x20] sm:$0xff]  ;;  %v1391_v43 = vld [vmem:[%s1986_s25 + $0x28] sm:$0xff]  ;;  %1382 = vst [vmem:[%s2444_s24] sm:$0xff] %v1381_v44 }
 0x124   : > { %1384 = vst [vmem:[%s2444_s24 + $0x8] sm:$0xff] %v1383_v14  ;;  %1386 = vst [vmem:[%s2444_s24 + $0x10] sm:$0xff] %v1385_v62  ;;  %v1393_v41 = vld [vmem:[%s1986_s25 + $0x30] sm:$0xff]  ;;  %v1395_v46 = vld [vmem:[%s1986_s25 + $0x38] sm:$0xff] }
 0x125   : > { %1388 = vst [vmem:[%s2444_s24 + $0x18] sm:$0xff] %v1387_v42  ;;  %1390 = vst [vmem:[%s2444_s24 + $0x20] sm:$0xff] %v1389_v40  ;;  %v1397_v53 = vld [vmem:[%s1986_s25 + $0x40] sm:$0xff]  ;;  %v1399_v0 = vld [vmem:[%s1986_s25 + $0x48] sm:$0xff] }
 0x126   : > { %1392 = vst [vmem:[%s2444_s24 + $0x28] sm:$0xff] %v1391_v43  ;;  %1394 = vst [vmem:[%s2444_s24 + $0x30] sm:$0xff] %v1393_v41  ;;  %v1401_v1 = vld [vmem:[%s1986_s25 + $0x50] sm:$0xff]  ;;  %v1403_v20 = vld [vmem:[%s1986_s25 + $0x58] sm:$0xff] }
 0x127   : > { %1396 = vst [vmem:[%s2444_s24 + $0x38] sm:$0xff] %v1395_v46  ;;  %1398 = vst [vmem:[%s2444_s24 + $0x80] sm:$0xff] %v1397_v53  ;;  %v1405_v4 = vld [vmem:[%s1986_s25 + $0x60] sm:$0xff]  ;;  %v1407_v12 = vld [vmem:[%s1986_s25 + $0x68] sm:$0xff] }
 0x128   : > { %1400 = vst [vmem:[%s2444_s24 + $0x88] sm:$0xff] %v1399_v0  ;;  %1402 = vst [vmem:[%s2444_s24 + $0x90] sm:$0xff] %v1401_v1  ;;  %v1409_v5 = vld [vmem:[%s1986_s25 + $0x70] sm:$0xff]  ;;  %v1411_v25 = vld [vmem:[%s1986_s25 + $0x78] sm:$0xff] }
 0x129   : > { %1404 = vst [vmem:[%s2444_s24 + $0x98] sm:$0xff] %v1403_v20  ;;  %1406 = vst [vmem:[%s2444_s24 + $0xa0] sm:$0xff] %v1405_v4  ;;  %v1413_v9 = vld [vmem:[%s1986_s25 + $0x80] sm:$0xff]  ;;  %v1415_v16 = vld [vmem:[%s1986_s25 + $0x88] sm:$0xff] }
 0x12a   : > { %1408 = vst [vmem:[%s2444_s24 + $0xa8] sm:$0xff] %v1407_v12  ;;  %1410 = vst [vmem:[%s2444_s24 + $0xb0] sm:$0xff] %v1409_v5  ;;  %v1417_v47 = vld [vmem:[%s1986_s25 + $0x90] sm:$0xff]  ;;  %v1419_v10 = vld [vmem:[%s1986_s25 + $0x98] sm:$0xff] }
 0x12b   : > { %1412 = vst [vmem:[%s2444_s24 + $0xb8] sm:$0xff] %v1411_v25  ;;  %1414 = vst [vmem:[%s2444_s24 + $0x100] sm:$0xff] %v1413_v9  ;;  %v1421_v17 = vld [vmem:[%s1986_s25 + $0xa0] sm:$0xff]  ;;  %v1423_v18 = vld [vmem:[%s1986_s25 + $0xa8] sm:$0xff] }
 0x12c   : > { %1416 = vst [vmem:[%s2444_s24 + $0x108] sm:$0xff] %v1415_v16  ;;  %1418 = vst [vmem:[%s2444_s24 + $0x110] sm:$0xff] %v1417_v47  ;;  %v1425_v11 = vld [vmem:[%s1986_s25 + $0xb0] sm:$0xff]  ;;  %v1427_v15 = vld [vmem:[%s1986_s25 + $0xb8] sm:$0xff] }
 0x12d   : > { %1420 = vst [vmem:[%s2444_s24 + $0x118] sm:$0xff] %v1419_v10  ;;  %1422 = vst [vmem:[%s2444_s24 + $0x120] sm:$0xff] %v1421_v17  ;;  %v1429_v48 = vld [vmem:[%s1986_s25 + $0xc0] sm:$0xff]  ;;  %v1431_v19 = vld [vmem:[%s1986_s25 + $0xc8] sm:$0xff] }
 0x12e   : > { %1424 = vst [vmem:[%s2444_s24 + $0x128] sm:$0xff] %v1423_v18  ;;  %1426 = vst [vmem:[%s2444_s24 + $0x130] sm:$0xff] %v1425_v11  ;;  %v1433_v55 = vld [vmem:[%s1986_s25 + $0xd0] sm:$0xff]  ;;  %v1435_v21 = vld [vmem:[%s1986_s25 + $0xd8] sm:$0xff] }
 0x12f   : > { %1428 = vst [vmem:[%s2444_s24 + $0x138] sm:$0xff] %v1427_v15  ;;  %1430 = vst [vmem:[%s2444_s24 + $0x180] sm:$0xff] %v1429_v48  ;;  %v1437_v22 = vld [vmem:[%s1986_s25 + $0xe0] sm:$0xff]  ;;  %v1439_v57 = vld [vmem:[%s1986_s25 + $0xe8] sm:$0xff] }
 0x130   : > { %1432 = vst [vmem:[%s2444_s24 + $0x188] sm:$0xff] %v1431_v19  ;;  %1434 = vst [vmem:[%s2444_s24 + $0x190] sm:$0xff] %v1433_v55  ;;  %v1441_v23 = vld [vmem:[%s1986_s25 + $0xf0] sm:$0xff]  ;;  %v1443_v24 = vld [vmem:[%s1986_s25 + $0xf8] sm:$0xff] }
 0x131   : > { %1436 = vst [vmem:[%s2444_s24 + $0x198] sm:$0xff] %v1435_v21  ;;  %1438 = vst [vmem:[%s2444_s24 + $0x1a0] sm:$0xff] %v1437_v22  ;;  %v1445_v28 = vld [vmem:[%s1986_s25 + $0x100] sm:$0xff]  ;;  %v1447_v29 = vld [vmem:[%s1986_s25 + $0x108] sm:$0xff] }
 0x132   : > { %1440 = vst [vmem:[%s2444_s24 + $0x1a8] sm:$0xff] %v1439_v57  ;;  %1442 = vst [vmem:[%s2444_s24 + $0x1b0] sm:$0xff] %v1441_v23  ;;  %v1449_v30 = vld [vmem:[%s1986_s25 + $0x110] sm:$0xff]  ;;  %v1451_v35 = vld [vmem:[%s1986_s25 + $0x118] sm:$0xff] }
 0x133   : > { %1444 = vst [vmem:[%s2444_s24 + $0x1b8] sm:$0xff] %v1443_v24  ;;  %1446 = vst [vmem:[%s2444_s24 + $0x200] sm:$0xff] %v1445_v28  ;;  %v1453_v36 = vld [vmem:[%s1986_s25 + $0x120] sm:$0xff]  ;;  %v1455_v31 = vld [vmem:[%s1986_s25 + $0x128] sm:$0xff] }
 0x134   : > { %1448 = vst [vmem:[%s2444_s24 + $0x208] sm:$0xff] %v1447_v29  ;;  %1450 = vst [vmem:[%s2444_s24 + $0x210] sm:$0xff] %v1449_v30  ;;  %v1457_v32 = vld [vmem:[%s1986_s25 + $0x130] sm:$0xff]  ;;  %v1459_v2 = vld [vmem:[%s1986_s25 + $0x138] sm:$0xff] }
 0x135   : > { %1452 = vst [vmem:[%s2444_s24 + $0x218] sm:$0xff] %v1451_v35  ;;  %1454 = vst [vmem:[%s2444_s24 + $0x220] sm:$0xff] %v1453_v36  ;;  %v1461_v13 = vld [vmem:[%s1986_s25 + $0x140] sm:$0xff]  ;;  %v1463_v34 = vld [vmem:[%s1986_s25 + $0x148] sm:$0xff] }
 0x136   : > { %1456 = vst [vmem:[%s2444_s24 + $0x228] sm:$0xff] %v1455_v31  ;;  %1458 = vst [vmem:[%s2444_s24 + $0x230] sm:$0xff] %v1457_v32  ;;  %v1465_v38 = vld [vmem:[%s1986_s25 + $0x150] sm:$0xff]  ;;  %v1467_v45 = vld [vmem:[%s1986_s25 + $0x158] sm:$0xff] }
 0x137   : > { %1460 = vst [vmem:[%s2444_s24 + $0x238] sm:$0xff] %v1459_v2  ;;  %1462 = vst [vmem:[%s2444_s24 + $0x280] sm:$0xff] %v1461_v13  ;;  %v1469_v6 = vld [vmem:[%s1986_s25 + $0x160] sm:$0xff]  ;;  %v1471_v50 = vld [vmem:[%s1986_s25 + $0x168] sm:$0xff] }
 0x138   : > { %1464 = vst [vmem:[%s2444_s24 + $0x288] sm:$0xff] %v1463_v34  ;;  %1466 = vst [vmem:[%s2444_s24 + $0x290] sm:$0xff] %v1465_v38  ;;  %v1473_v58 = vld [vmem:[%s1986_s25 + $0x170] sm:$0xff]  ;;  %v1475_v51 = vld [vmem:[%s1986_s25 + $0x178] sm:$0xff] }
 0x139   : > { %1468 = vst [vmem:[%s2444_s24 + $0x298] sm:$0xff] %v1467_v45  ;;  %1470 = vst [vmem:[%s2444_s24 + $0x2a0] sm:$0xff] %v1469_v6  ;;  %v1477_v52 = vld [vmem:[%s1986_s25 + $0x180] sm:$0xff]  ;;  %v1479_v26 = vld [vmem:[%s1986_s25 + $0x188] sm:$0xff] }
 0x13a   : > { %1472 = vst [vmem:[%s2444_s24 + $0x2a8] sm:$0xff] %v1471_v50  ;;  %1474 = vst [vmem:[%s2444_s24 + $0x2b0] sm:$0xff] %v1473_v58  ;;  %v1481_v27 = vld [vmem:[%s1986_s25 + $0x190] sm:$0xff]  ;;  %v1483_v7 = vld [vmem:[%s1986_s25 + $0x198] sm:$0xff] }
 0x13b   : > { %1476 = vst [vmem:[%s2444_s24 + $0x2b8] sm:$0xff] %v1475_v51  ;;  %1478 = vst [vmem:[%s2444_s24 + $0x300] sm:$0xff] %v1477_v52  ;;  %v1485_v3 = vld [vmem:[%s1986_s25 + $0x1a0] sm:$0xff]  ;;  %v1487_v59 = vld [vmem:[%s1986_s25 + $0x1a8] sm:$0xff] }
 0x13c   : > { %1480 = vst [vmem:[%s2444_s24 + $0x308] sm:$0xff] %v1479_v26  ;;  %1482 = vst [vmem:[%s2444_s24 + $0x310] sm:$0xff] %v1481_v27  ;;  %v1489_v60 = vld [vmem:[%s1986_s25 + $0x1b0] sm:$0xff]  ;;  %v1491_v61 = vld [vmem:[%s1986_s25 + $0x1b8] sm:$0xff] }
 0x13d   : > { %1484 = vst [vmem:[%s2444_s24 + $0x318] sm:$0xff] %v1483_v7  ;;  %1486 = vst [vmem:[%s2444_s24 + $0x320] sm:$0xff] %v1485_v3  ;;  %v1493_v8 = vld [vmem:[%s1986_s25 + $0x1c0] sm:$0xff]  ;;  %v1495_v39 = vld [vmem:[%s1986_s25 + $0x1c8] sm:$0xff] }
 0x13e   : > { %1488 = vst [vmem:[%s2444_s24 + $0x328] sm:$0xff] %v1487_v59  ;;  %1490 = vst [vmem:[%s2444_s24 + $0x330] sm:$0xff] %v1489_v60  ;;  %v1497_v54 = vld [vmem:[%s1986_s25 + $0x1d0] sm:$0xff]  ;;  %v1499_v33 = vld [vmem:[%s1986_s25 + $0x1d8] sm:$0xff] }
 0x13f   : > { %1492 = vst [vmem:[%s2444_s24 + $0x338] sm:$0xff] %v1491_v61  ;;  %1494 = vst [vmem:[%s2444_s24 + $0x380] sm:$0xff] %v1493_v8  ;;  %v1501_v49 = vld [vmem:[%s1986_s25 + $0x1e0] sm:$0xff]  ;;  %v1503_v37 = vld [vmem:[%s1986_s25 + $0x1e8] sm:$0xff] }
 0x140   : > { %1496 = vst [vmem:[%s2444_s24 + $0x388] sm:$0xff] %v1495_v39  ;;  %1498 = vst [vmem:[%s2444_s24 + $0x390] sm:$0xff] %v1497_v54  ;;  %v1505_v63 = vld [vmem:[%s1986_s25 + $0x1f0] sm:$0xff]  ;;  %v1507_v56 = vld [vmem:[%s1986_s25 + $0x1f8] sm:$0xff] }
 0x141   : > { %1500 = vst [vmem:[%s2444_s24 + $0x398] sm:$0xff] %v1499_v33  ;;  %1502 = vst [vmem:[%s2444_s24 + $0x3a0] sm:$0xff] %v1501_v49 }
 0x142   : > { %1504 = vst [vmem:[%s2444_s24 + $0x3a8] sm:$0xff] %v1503_v37  ;;  %1506 = vst [vmem:[%s2444_s24 + $0x3b0] sm:$0xff] %v1505_v63 }
 0x143   : > { %1508 = vst [vmem:[%s2444_s24 + $0x3b8] sm:$0xff] %v1507_v56 }
 0x144 PF: > { %p11_p11 = scmp.ge.s32.totalorder %s1807_s19, 4   ;;  %s2588_s15 = smov %s1755_s16 }
 0x145   : > { %s2589_s16 = smov %s1818_s22  ;;  %s2590_s17 = smov %s1807_s19 }
 0x146   :  { %13 = sbr.rel (!%p11_p11) target bundleno = 2 (0x2), region = 184 }

</bundles_post_ra>
